<compile_context>
chip_gen: v7x
topology: tpu7x:2x2x1
jax: 0.10.0
libtpu: 0.0.40
codegen_flags: <defaults>
</compile_context>

<pallas_src>
import functools

import jax
import jax.numpy as jnp
from jax.experimental import pallas as pl
from jax.experimental.pallas import tpu as pltpu

EPS = 1e-8


def _round_up(x, m):
    return ((x + m - 1) // m) * m


def _pick_tile(M):
    """Lane tile (multiple of 128). Smaller tiles for small layers so >=2 tiles exist
    where possible (feeds both TensorCores on v7x); layer 4 (M=72) stays 1 tile."""
    if M >= 1024:
        tm = 512
    elif M >= 256:
        tm = 256
    else:
        tm = 128
    return tm, _round_up(M, tm)


# ----------------------------- Pallas kernels -----------------------------

def _lif_conv_kernel(p_ref, w_ref, thr_ref, rst_ref, spk_ref, mem_ref, *, beta):
    # grid = (row_tiles [parallel], T [arbitrary, innermost]); mem_ref is VMEM scratch
    # carried across the T axis for the current row tile.
    @pl.when(pl.program_id(1) == 0)
    def _():
        mem_ref[...] = jnp.zeros_like(mem_ref)          # fresh membrane at t == 0

    # conv-as-matmul, lane-dense (Cout, tm) result: bf16 operands, f32 accumulate (MXU)
    conv = jnp.dot(w_ref[...], p_ref[0], preferred_element_type=jnp.float32)
    mem_new = beta * mem_ref[...] + (1.0 - beta) * conv  # leaky integrate (f32, VPU)
    spk = (mem_new > thr_ref[...]).astype(jnp.float32)   # Heaviside fwd; thr = b*(||w||^2+eps)
    spk_ref[0] = spk.astype(jnp.bfloat16)                # exact 0/1, lossless in bf16
    mem_ref[...] = mem_new - spk * rst_ref[...]          # soft reset folded into carried state


def _readout_kernel(x_ref, w_ref, b_ref, out_ref):
    # w already folded with (1-beta)/(||w||^2+eps) on the host
    out_ref[...] = jnp.dot(x_ref[...], w_ref[...],
                           preferred_element_type=jnp.float32) - b_ref[...]


# ----------------------------- kernel wrappers -----------------------------

def lif_conv_layer(patches, w2d, thr, rst, beta, tm):
    """patches: (T, K, Mp) bf16, w2d: (Cout, K) bf16, thr/rst: (Cout, 1) f32.
    Returns spikes (T, Cout, Mp) bf16. One pallas_call for the whole time loop."""
    T, K, Mp = patches.shape
    N = w2d.shape[0]
    kern = functools.partial(_lif_conv_kernel, beta=beta)
    return pl.pallas_call(
        kern,
        out_shape=jax.ShapeDtypeStruct((T, N, Mp), jnp.bfloat16),
        grid=(Mp // tm, T),
        in_specs=[
            pl.BlockSpec((1, K, tm), lambda i, t: (t, 0, i)),   # patch tile (lane-dense on M)
            pl.BlockSpec((N, K), lambda i, t: (0, 0)),          # flattened conv weight
            pl.BlockSpec((N, 1), lambda i, t: (0, 0)),          # thr = b*(||w||^2+eps)
            pl.BlockSpec((N, 1), lambda i, t: (0, 0)),          # rst = b*||w||^2
        ],
        out_specs=pl.BlockSpec((1, N, tm), lambda i, t: (t, i, 0)),
        scratch_shapes=[pltpu.VMEM((N, tm), jnp.float32)],      # membrane, lives across T
        compiler_params=pltpu.CompilerParams(
            dimension_semantics=("parallel", "arbitrary")),
    )(patches, w2d, thr, rst)


def readout(x, w_eff, b):
    """Single affine readout applied to the time-mean of the flattened spikes."""
    B, K = x.shape
    N = w_eff.shape[1]
    Bp = _round_up(B, 8)
    x_pad = jnp.pad(x, ((0, Bp - B), (0, 0)))
    out = pl.pallas_call(
        _readout_kernel,
        out_shape=jax.ShapeDtypeStruct((Bp, N), jnp.float32),
        grid=(1,),
        in_specs=[pl.BlockSpec((Bp, K), lambda i: (0, 0)),
                  pl.BlockSpec((K, N), lambda i: (0, 0)),
                  pl.BlockSpec((1, N), lambda i: (0, 0))],
        out_specs=pl.BlockSpec((Bp, N), lambda i: (0, 0)),
    )(x_pad, w_eff, b)
    return out[:B]


# ----------------------------- JAX glue -----------------------------

def extract_patches_cm(a, k, s):
    """Channel-major im2col over all T at once (padding=0, dilation=1).
    a: (T, C, B, H, W) -> patches (T, C*k*k, B*Ho*Wo); row order (cin, di, dj) matches
    w.reshape(Cout, Cin*kh*kw)."""
    T, C, B, H, W = a.shape
    Ho = (H - k) // s + 1
    Wo = (W - k) // s + 1
    cols = []
    for di in range(k):
        for dj in range(k):
            cols.append(a[:, :, :, di:di + s * Ho:s, dj:dj + s * Wo:s])  # (T,C,B,Ho,Wo)
    p = jnp.stack(cols, axis=2)                       # (T, C, k*k, B, Ho, Wo)
    return p.reshape(T, C * k * k, B * Ho * Wo), Ho, Wo


def init_params(key,
                w_means=(0.0, 0.0, 0.0, 0.0, 0.0),
                w_stds=(0.15, 0.15, 0.15, 0.15, 0.15),
                betas=(0.7, 0.7, 0.7, 0.7, 0.7),
                bs=(1.0, 1.0, 1.0, 1.0, 0.0)):
    cfgs = [dict(cin=1, cout=4, k=5, s=2),
            dict(cin=4, cout=8, k=5, s=2),
            dict(cin=8, cout=8, k=3, s=2),
            dict(cin=8, cout=16, k=3, s=2)]
    keys = jax.random.split(key, 5)
    conv_params = []
    for i, c in enumerate(cfgs):
        fan_in = c["cin"] * c["k"] * c["k"]
        # s2net init: w ~ N(mean, std*sqrt(1/fan_in)), PyTorch layout (Cout, Cin, kh, kw)
        w = w_means[i] + w_stds[i] * jnp.sqrt(1.0 / fan_in) * jax.random.normal(
            keys[i], (c["cout"], c["cin"], c["k"], c["k"]), jnp.float32)
        nrm = jnp.sum(w * w, axis=(1, 2, 3)).reshape(c["cout"], 1)      # ||w||^2 (f32, pre-cast)
        b = float(bs[i])
        conv_params.append(dict(
            w2d=w.reshape(c["cout"], fan_in).astype(jnp.bfloat16),      # (Cout, K), K order (cin, kh, kw)
            thr=(b * (nrm + EPS)).astype(jnp.float32),                  # spike iff mem > thr
            rst=(b * nrm).astype(jnp.float32),                          # soft-reset magnitude
            beta=float(betas[i]), k=c["k"], s=c["s"], cout=c["cout"]))
    in_dim, out_dim = 16 * 6 * 6, 11
    wr = w_means[4] + w_stds[4] * jnp.sqrt(1.0 / in_dim) * jax.random.normal(
        keys[4], (in_dim, out_dim), jnp.float32)
    nr = jnp.sum(wr * wr, axis=0).reshape(1, out_dim)
    ro = dict(w_eff=(wr * ((1.0 - betas[4]) / (nr + EPS))).astype(jnp.float32),
              b=jnp.full((1, out_dim), bs[4], jnp.float32))
    return conv_params, ro


def dense_snn_forward(x, conv_params, ro, scale=3.0):
    """x: (B, 1, T, H, W) -> (B, 11), mean over time of per-step readout outputs."""
    # TODO(synk): `scale` parametrizes only the surrogate-gradient slope (backward pass);
    #             it has no effect on forward spikes, so it is intentionally unused.
    B = x.shape[0]
    T = x.shape[2]
    a = jnp.transpose(x, (2, 1, 0, 3, 4)).astype(jnp.bfloat16)   # (T, C, B, H, W), channel-major
    for p in conv_params:
        patches, Ho, Wo = extract_patches_cm(a, p["k"], p["s"])  # (T, K, M) bf16, all T at once
        M = patches.shape[-1]
        tm, Mp = _pick_tile(M)
        patches = jnp.pad(patches, ((0, 0), (0, 0), (0, Mp - M)))  # one pad per layer per forward
        spk = lif_conv_layer(patches, p["w2d"], p["thr"], p["rst"], p["beta"], tm)  # (T,Cout,Mp)
        a = spk[:, :, :M].reshape(T, p["cout"], B, Ho, Wo)         # one slice per layer per forward
    # Readout is affine in x => mean_t(readout(flat_t)) == readout(mean_t(flat_t)) exactly.
    mean_spk = a.astype(jnp.float32).mean(axis=0)                  # (C, B, Ho, Wo)
    flat = jnp.transpose(mean_spk, (1, 0, 2, 3)).reshape(B, -1)    # PyTorch flatten order (c, h, w)
    return readout(flat, ro["w_eff"], ro["b"])


if __name__ == "__main__":
    key = jax.random.PRNGKey(0)
    kx, kp = jax.random.split(key)
    # H=W=128 is the smallest canonical size consistent with the 16*6*6 readout
    # (padding=0, four stride-2 convs: 128 -> 62 -> 29 -> 14 -> 6); small B and T.
    B, T, H, W = 2, 4, 128, 128
    x = (jax.random.uniform(kx, (B, 1, T, H, W)) < 0.2).astype(jnp.float32)  # event-like 0/1 input
    conv_params, ro = init_params(kp)

    fwd = jax.jit(lambda inp: dense_snn_forward(inp, conv_params, ro))
    out = fwd(x)
    jax.block_until_ready(out)
    assert out.shape == (B, 11) and out.dtype == jnp.float32
    print("KERNEL_OK")
</pallas_src>

<mosaic_0001>
module attributes {stable_mosaic.version = 11 : i64} {
  func.func @_lif_conv_kernel(%arg0: i32, %arg1: i32, %arg2: memref<1x25x512xbf16, #tpu.memory_space<vmem>>, %arg3: memref<4x25xbf16, #tpu.memory_space<vmem>>, %arg4: memref<4x1xf32, #tpu.memory_space<vmem>>, %arg5: memref<4x1xf32, #tpu.memory_space<vmem>>, %arg6: memref<1x4x512xbf16, #tpu.memory_space<vmem>>, %arg7: memref<4x512xf32, #tpu.memory_space<vmem>>) attributes {dimension_semantics = [#tpu.dimension_semantics<parallel>, #tpu.dimension_semantics<arbitrary>], iteration_bounds = array<i64: 16, 4>, scalar_prefetch = 0 : i64, scratch_operands = 1 : i64, tpu.core_type = #tpu.core_type<tc>, window_params = [{transform_indices = @transform_0, window_bounds = array<i64: 1, 25, 512>}, {pipeline_mode = #tpu.pipeline_mode<synchronous>, transform_indices = @transform_1, window_bounds = array<i64: 4, 25>}, {pipeline_mode = #tpu.pipeline_mode<synchronous>, transform_indices = @transform_2, window_bounds = array<i64: 4, 1>}, {pipeline_mode = #tpu.pipeline_mode<synchronous>, transform_indices = @transform_3, window_bounds = array<i64: 4, 1>}, {transform_indices = @transform_4, window_bounds = array<i64: 1, 4, 512>}]} {
    %c0_i32 = arith.constant 0 : i32
    %0 = arith.cmpi eq, %arg1, %c0_i32 : i32
    %1 = arith.extui %0 : i1 to i32
    %c0_i32_0 = arith.constant 0 : i32
    %2 = arith.cmpi ne, %1, %c0_i32_0 : i32
    scf.if %2 {
      %cst_18 = arith.constant 0.000000e+00 : f32
      %27 = vector.broadcast %cst_18 : f32 to vector<4x512xf32>
      %c0_19 = arith.constant 0 : index
      %c0_20 = arith.constant 0 : index
      %28 = vector.load %arg7[%c0_19, %c0_20] : memref<4x512xf32, #tpu.memory_space<vmem>>, vector<4x512xf32>
      tpu.vector_store %arg7[%c0_19, %c0_20], %27 {strides = array<i32>} : memref<4x512xf32, #tpu.memory_space<vmem>>, vector<4x512xf32>,
    } else {
    }
    %c0 = arith.constant 0 : index
    %c0_1 = arith.constant 0 : index
    %3 = vector.load %arg3[%c0, %c0_1] : memref<4x25xbf16, #tpu.memory_space<vmem>>, vector<4x25xbf16>
    %c0_2 = arith.constant 0 : index
    %c0_3 = arith.constant 0 : index
    %c0_4 = arith.constant 0 : index
    %4 = vector.load %arg2[%c0_2, %c0_3, %c0_4] : memref<1x25x512xbf16, #tpu.memory_space<vmem>>, vector<1x25x512xbf16>
    %5 = vector.shape_cast %4 : vector<1x25x512xbf16> to vector<25x512xbf16>
    %cst = arith.constant dense<0.000000e+00> : vector<4x512xf32>
    %6 = tpu.matmul %3, %5, %cst {dimension_numbers = #tpu.dot_dimension_numbers<[1], [0], [0], [1], [0, 0, 1, 1], [], []>} : vector<4x25xbf16>, vector<25x512xbf16>, vector<4x512xf32> -> vector<4x512xf32>
    %c0_5 = arith.constant 0 : index
    %c0_6 = arith.constant 0 : index
    %7 = vector.load %arg7[%c0_5, %c0_6] : memref<4x512xf32, #tpu.memory_space<vmem>>, vector<4x512xf32>
    %cst_7 = arith.constant 0.699999988 : f32
    %8 = vector.broadcast %cst_7 : f32 to vector<4x512xf32>
    %9 = arith.mulf %8, %7 : vector<4x512xf32>
    %cst_8 = arith.constant 3.000000e-01 : f32
    %10 = vector.broadcast %cst_8 : f32 to vector<4x512xf32>
    %11 = arith.mulf %10, %6 : vector<4x512xf32>
    %12 = arith.addf %9, %11 : vector<4x512xf32>
    %c0_9 = arith.constant 0 : index
    %c0_10 = arith.constant 0 : index
    %13 = vector.load %arg4[%c0_9, %c0_10] : memref<4x1xf32, #tpu.memory_space<vmem>>, vector<4x1xf32>
    %14 = vector.broadcast %13 : vector<4x1xf32> to vector<4x512xf32>
    %15 = arith.cmpf ogt, %12, %14 : vector<4x512xf32>
    %16 = arith.extui %15 : vector<4x512xi1> to vector<4x512xi32>
    %17 = arith.sitofp %16 : vector<4x512xi32> to vector<4x512xf32>
    %18 = arith.truncf %17 : vector<4x512xf32> to vector<4x512xbf16>
    %c0_11 = arith.constant 0 : index
    %c0_12 = arith.constant 0 : index
    %c0_13 = arith.constant 0 : index
    %19 = vector.load %arg6[%c0_11, %c0_12, %c0_13] : memref<1x4x512xbf16, #tpu.memory_space<vmem>>, vector<1x4x512xbf16>
    %20 = vector.shape_cast %19 : vector<1x4x512xbf16> to vector<4x512xbf16>
    %21 = vector.shape_cast %18 : vector<4x512xbf16> to vector<1x4x512xbf16>
    tpu.vector_store %arg6[%c0_11, %c0_12, %c0_13], %21 {strides = array<i32>} : memref<1x4x512xbf16, #tpu.memory_space<vmem>>, vector<1x4x512xbf16>,
    %c0_14 = arith.constant 0 : index
    %c0_15 = arith.constant 0 : index
    %22 = vector.load %arg5[%c0_14, %c0_15] : memref<4x1xf32, #tpu.memory_space<vmem>>, vector<4x1xf32>
    %23 = vector.broadcast %22 : vector<4x1xf32> to vector<4x512xf32>
    %24 = arith.mulf %17, %23 : vector<4x512xf32>
    %25 = arith.subf %12, %24 : vector<4x512xf32>
    %c0_16 = arith.constant 0 : index
    %c0_17 = arith.constant 0 : index
    %26 = vector.load %arg7[%c0_16, %c0_17] : memref<4x512xf32, #tpu.memory_space<vmem>>, vector<4x512xf32>
    tpu.vector_store %arg7[%c0_16, %c0_17], %25 {strides = array<i32>} : memref<4x512xf32, #tpu.memory_space<vmem>>, vector<4x512xf32>,
    return
  }
  func.func @transform_0(%arg0: i32, %arg1: i32) -> (i32, i32, i32) {
    %c0_i32 = arith.constant 0 : i32
    %c0_i32_0 = arith.constant 0 : i32
    return %arg1, %c0_i32, %arg0 : i32, i32, i32
  }
  func.func @transform_1(%arg0: i32, %arg1: i32) -> (i32, i32) {
    %c0_i32 = arith.constant 0 : i32
    %c0_i32_0 = arith.constant 0 : i32
    %c0_i32_1 = arith.constant 0 : i32
    return %c0_i32, %c0_i32_0 : i32, i32
  }
  func.func @transform_2(%arg0: i32, %arg1: i32) -> (i32, i32) {
    %c0_i32 = arith.constant 0 : i32
    %c0_i32_0 = arith.constant 0 : i32
    %c0_i32_1 = arith.constant 0 : i32
    return %c0_i32, %c0_i32_0 : i32, i32
  }
  func.func @transform_3(%arg0: i32, %arg1: i32) -> (i32, i32) {
    %c0_i32 = arith.constant 0 : i32
    %c0_i32_0 = arith.constant 0 : i32
    %c0_i32_1 = arith.constant 0 : i32
    return %c0_i32, %c0_i32_0 : i32, i32
  }
  func.func @transform_4(%arg0: i32, %arg1: i32) -> (i32, i32, i32) {
    %c0_i32 = arith.constant 0 : i32
    %c0_i32_0 = arith.constant 0 : i32
    return %arg1, %arg0, %c0_i32 : i32, i32, i32
  }
}

module attributes {stable_mosaic.version = 11 : i64} {
  func.func @_lif_conv_kernel(%arg0: i32, %arg1: i32, %arg2: memref<1x100x512xbf16, #tpu.memory_space<vmem>>, %arg3: memref<8x100xbf16, #tpu.memory_space<vmem>>, %arg4: memref<8x1xf32, #tpu.memory_space<vmem>>, %arg5: memref<8x1xf32, #tpu.memory_space<vmem>>, %arg6: memref<1x8x512xbf16, #tpu.memory_space<vmem>>, %arg7: memref<8x512xf32, #tpu.memory_space<vmem>>) attributes {dimension_semantics = [#tpu.dimension_semantics<parallel>, #tpu.dimension_semantics<arbitrary>], iteration_bounds = array<i64: 4, 4>, scalar_prefetch = 0 : i64, scratch_operands = 1 : i64, tpu.core_type = #tpu.core_type<tc>, window_params = [{transform_indices = @transform_0, window_bounds = array<i64: 1, 100, 512>}, {pipeline_mode = #tpu.pipeline_mode<synchronous>, transform_indices = @transform_1, window_bounds = array<i64: 8, 100>}, {pipeline_mode = #tpu.pipeline_mode<synchronous>, transform_indices = @transform_2, window_bounds = array<i64: 8, 1>}, {pipeline_mode = #tpu.pipeline_mode<synchronous>, transform_indices = @transform_3, window_bounds = array<i64: 8, 1>}, {transform_indices = @transform_4, window_bounds = array<i64: 1, 8, 512>}]} {
    %c0_i32 = arith.constant 0 : i32
    %0 = arith.cmpi eq, %arg1, %c0_i32 : i32
    %1 = arith.extui %0 : i1 to i32
    %c0_i32_0 = arith.constant 0 : i32
    %2 = arith.cmpi ne, %1, %c0_i32_0 : i32
    scf.if %2 {
      %cst_18 = arith.constant 0.000000e+00 : f32
      %27 = vector.broadcast %cst_18 : f32 to vector<8x512xf32>
      %c0_19 = arith.constant 0 : index
      %c0_20 = arith.constant 0 : index
      %28 = vector.load %arg7[%c0_19, %c0_20] : memref<8x512xf32, #tpu.memory_space<vmem>>, vector<8x512xf32>
      tpu.vector_store %arg7[%c0_19, %c0_20], %27 {strides = array<i32>} : memref<8x512xf32, #tpu.memory_space<vmem>>, vector<8x512xf32>,
    } else {
    }
    %c0 = arith.constant 0 : index
    %c0_1 = arith.constant 0 : index
    %3 = vector.load %arg3[%c0, %c0_1] : memref<8x100xbf16, #tpu.memory_space<vmem>>, vector<8x100xbf16>
    %c0_2 = arith.constant 0 : index
    %c0_3 = arith.constant 0 : index
    %c0_4 = arith.constant 0 : index
    %4 = vector.load %arg2[%c0_2, %c0_3, %c0_4] : memref<1x100x512xbf16, #tpu.memory_space<vmem>>, vector<1x100x512xbf16>
    %5 = vector.shape_cast %4 : vector<1x100x512xbf16> to vector<100x512xbf16>
    %cst = arith.constant dense<0.000000e+00> : vector<8x512xf32>
    %6 = tpu.matmul %3, %5, %cst {dimension_numbers = #tpu.dot_dimension_numbers<[1], [0], [0], [1], [0, 0, 1, 1], [], []>} : vector<8x100xbf16>, vector<100x512xbf16>, vector<8x512xf32> -> vector<8x512xf32>
    %c0_5 = arith.constant 0 : index
    %c0_6 = arith.constant 0 : index
    %7 = vector.load %arg7[%c0_5, %c0_6] : memref<8x512xf32, #tpu.memory_space<vmem>>, vector<8x512xf32>
    %cst_7 = arith.constant 0.699999988 : f32
    %8 = vector.broadcast %cst_7 : f32 to vector<8x512xf32>
    %9 = arith.mulf %8, %7 : vector<8x512xf32>
    %cst_8 = arith.constant 3.000000e-01 : f32
    %10 = vector.broadcast %cst_8 : f32 to vector<8x512xf32>
    %11 = arith.mulf %10, %6 : vector<8x512xf32>
    %12 = arith.addf %9, %11 : vector<8x512xf32>
    %c0_9 = arith.constant 0 : index
    %c0_10 = arith.constant 0 : index
    %13 = vector.load %arg4[%c0_9, %c0_10] : memref<8x1xf32, #tpu.memory_space<vmem>>, vector<8x1xf32>
    %14 = vector.broadcast %13 : vector<8x1xf32> to vector<8x512xf32>
    %15 = arith.cmpf ogt, %12, %14 : vector<8x512xf32>
    %16 = arith.extui %15 : vector<8x512xi1> to vector<8x512xi32>
    %17 = arith.sitofp %16 : vector<8x512xi32> to vector<8x512xf32>
    %18 = arith.truncf %17 : vector<8x512xf32> to vector<8x512xbf16>
    %c0_11 = arith.constant 0 : index
    %c0_12 = arith.constant 0 : index
    %c0_13 = arith.constant 0 : index
    %19 = vector.load %arg6[%c0_11, %c0_12, %c0_13] : memref<1x8x512xbf16, #tpu.memory_space<vmem>>, vector<1x8x512xbf16>
    %20 = vector.shape_cast %19 : vector<1x8x512xbf16> to vector<8x512xbf16>
    %21 = vector.shape_cast %18 : vector<8x512xbf16> to vector<1x8x512xbf16>
    tpu.vector_store %arg6[%c0_11, %c0_12, %c0_13], %21 {strides = array<i32>} : memref<1x8x512xbf16, #tpu.memory_space<vmem>>, vector<1x8x512xbf16>,
    %c0_14 = arith.constant 0 : index
    %c0_15 = arith.constant 0 : index
    %22 = vector.load %arg5[%c0_14, %c0_15] : memref<8x1xf32, #tpu.memory_space<vmem>>, vector<8x1xf32>
    %23 = vector.broadcast %22 : vector<8x1xf32> to vector<8x512xf32>
    %24 = arith.mulf %17, %23 : vector<8x512xf32>
    %25 = arith.subf %12, %24 : vector<8x512xf32>
    %c0_16 = arith.constant 0 : index
    %c0_17 = arith.constant 0 : index
    %26 = vector.load %arg7[%c0_16, %c0_17] : memref<8x512xf32, #tpu.memory_space<vmem>>, vector<8x512xf32>
    tpu.vector_store %arg7[%c0_16, %c0_17], %25 {strides = array<i32>} : memref<8x512xf32, #tpu.memory_space<vmem>>, vector<8x512xf32>,
    return
  }
  func.func @transform_0(%arg0: i32, %arg1: i32) -> (i32, i32, i32) {
    %c0_i32 = arith.constant 0 : i32
    %c0_i32_0 = arith.constant 0 : i32
    return %arg1, %c0_i32, %arg0 : i32, i32, i32
  }
  func.func @transform_1(%arg0: i32, %arg1: i32) -> (i32, i32) {
    %c0_i32 = arith.constant 0 : i32
    %c0_i32_0 = arith.constant 0 : i32
    %c0_i32_1 = arith.constant 0 : i32
    return %c0_i32, %c0_i32_0 : i32, i32
  }
  func.func @transform_2(%arg0: i32, %arg1: i32) -> (i32, i32) {
    %c0_i32 = arith.constant 0 : i32
    %c0_i32_0 = arith.constant 0 : i32
    %c0_i32_1 = arith.constant 0 : i32
    return %c0_i32, %c0_i32_0 : i32, i32
  }
  func.func @transform_3(%arg0: i32, %arg1: i32) -> (i32, i32) {
    %c0_i32 = arith.constant 0 : i32
    %c0_i32_0 = arith.constant 0 : i32
    %c0_i32_1 = arith.constant 0 : i32
    return %c0_i32, %c0_i32_0 : i32, i32
  }
  func.func @transform_4(%arg0: i32, %arg1: i32) -> (i32, i32, i32) {
    %c0_i32 = arith.constant 0 : i32
    %c0_i32_0 = arith.constant 0 : i32
    return %arg1, %arg0, %c0_i32 : i32, i32, i32
  }
}

module attributes {stable_mosaic.version = 11 : i64} {
  func.func @_lif_conv_kernel(%arg0: i32, %arg1: i32, %arg2: memref<1x72x256xbf16, #tpu.memory_space<vmem>>, %arg3: memref<8x72xbf16, #tpu.memory_space<vmem>>, %arg4: memref<8x1xf32, #tpu.memory_space<vmem>>, %arg5: memref<8x1xf32, #tpu.memory_space<vmem>>, %arg6: memref<1x8x256xbf16, #tpu.memory_space<vmem>>, %arg7: memref<8x256xf32, #tpu.memory_space<vmem>>) attributes {dimension_semantics = [#tpu.dimension_semantics<parallel>, #tpu.dimension_semantics<arbitrary>], iteration_bounds = array<i64: 2, 4>, scalar_prefetch = 0 : i64, scratch_operands = 1 : i64, tpu.core_type = #tpu.core_type<tc>, window_params = [{transform_indices = @transform_0, window_bounds = array<i64: 1, 72, 256>}, {pipeline_mode = #tpu.pipeline_mode<synchronous>, transform_indices = @transform_1, window_bounds = array<i64: 8, 72>}, {pipeline_mode = #tpu.pipeline_mode<synchronous>, transform_indices = @transform_2, window_bounds = array<i64: 8, 1>}, {pipeline_mode = #tpu.pipeline_mode<synchronous>, transform_indices = @transform_3, window_bounds = array<i64: 8, 1>}, {transform_indices = @transform_4, window_bounds = array<i64: 1, 8, 256>}]} {
    %c0_i32 = arith.constant 0 : i32
    %0 = arith.cmpi eq, %arg1, %c0_i32 : i32
    %1 = arith.extui %0 : i1 to i32
    %c0_i32_0 = arith.constant 0 : i32
    %2 = arith.cmpi ne, %1, %c0_i32_0 : i32
    scf.if %2 {
      %cst_18 = arith.constant 0.000000e+00 : f32
      %27 = vector.broadcast %cst_18 : f32 to vector<8x256xf32>
      %c0_19 = arith.constant 0 : index
      %c0_20 = arith.constant 0 : index
      %28 = vector.load %arg7[%c0_19, %c0_20] : memref<8x256xf32, #tpu.memory_space<vmem>>, vector<8x256xf32>
      tpu.vector_store %arg7[%c0_19, %c0_20], %27 {strides = array<i32>} : memref<8x256xf32, #tpu.memory_space<vmem>>, vector<8x256xf32>,
    } else {
    }
    %c0 = arith.constant 0 : index
    %c0_1 = arith.constant 0 : index
    %3 = vector.load %arg3[%c0, %c0_1] : memref<8x72xbf16, #tpu.memory_space<vmem>>, vector<8x72xbf16>
    %c0_2 = arith.constant 0 : index
    %c0_3 = arith.constant 0 : index
    %c0_4 = arith.constant 0 : index
    %4 = vector.load %arg2[%c0_2, %c0_3, %c0_4] : memref<1x72x256xbf16, #tpu.memory_space<vmem>>, vector<1x72x256xbf16>
    %5 = vector.shape_cast %4 : vector<1x72x256xbf16> to vector<72x256xbf16>
    %cst = arith.constant dense<0.000000e+00> : vector<8x256xf32>
    %6 = tpu.matmul %3, %5, %cst {dimension_numbers = #tpu.dot_dimension_numbers<[1], [0], [0], [1], [0, 0, 1, 1], [], []>} : vector<8x72xbf16>, vector<72x256xbf16>, vector<8x256xf32> -> vector<8x256xf32>
    %c0_5 = arith.constant 0 : index
    %c0_6 = arith.constant 0 : index
    %7 = vector.load %arg7[%c0_5, %c0_6] : memref<8x256xf32, #tpu.memory_space<vmem>>, vector<8x256xf32>
    %cst_7 = arith.constant 0.699999988 : f32
    %8 = vector.broadcast %cst_7 : f32 to vector<8x256xf32>
    %9 = arith.mulf %8, %7 : vector<8x256xf32>
    %cst_8 = arith.constant 3.000000e-01 : f32
    %10 = vector.broadcast %cst_8 : f32 to vector<8x256xf32>
    %11 = arith.mulf %10, %6 : vector<8x256xf32>
    %12 = arith.addf %9, %11 : vector<8x256xf32>
    %c0_9 = arith.constant 0 : index
    %c0_10 = arith.constant 0 : index
    %13 = vector.load %arg4[%c0_9, %c0_10] : memref<8x1xf32, #tpu.memory_space<vmem>>, vector<8x1xf32>
    %14 = vector.broadcast %13 : vector<8x1xf32> to vector<8x256xf32>
    %15 = arith.cmpf ogt, %12, %14 : vector<8x256xf32>
    %16 = arith.extui %15 : vector<8x256xi1> to vector<8x256xi32>
    %17 = arith.sitofp %16 : vector<8x256xi32> to vector<8x256xf32>
    %18 = arith.truncf %17 : vector<8x256xf32> to vector<8x256xbf16>
    %c0_11 = arith.constant 0 : index
    %c0_12 = arith.constant 0 : index
    %c0_13 = arith.constant 0 : index
    %19 = vector.load %arg6[%c0_11, %c0_12, %c0_13] : memref<1x8x256xbf16, #tpu.memory_space<vmem>>, vector<1x8x256xbf16>
    %20 = vector.shape_cast %19 : vector<1x8x256xbf16> to vector<8x256xbf16>
    %21 = vector.shape_cast %18 : vector<8x256xbf16> to vector<1x8x256xbf16>
    tpu.vector_store %arg6[%c0_11, %c0_12, %c0_13], %21 {strides = array<i32>} : memref<1x8x256xbf16, #tpu.memory_space<vmem>>, vector<1x8x256xbf16>,
    %c0_14 = arith.constant 0 : index
    %c0_15 = arith.constant 0 : index
    %22 = vector.load %arg5[%c0_14, %c0_15] : memref<8x1xf32, #tpu.memory_space<vmem>>, vector<8x1xf32>
    %23 = vector.broadcast %22 : vector<8x1xf32> to vector<8x256xf32>
    %24 = arith.mulf %17, %23 : vector<8x256xf32>
    %25 = arith.subf %12, %24 : vector<8x256xf32>
    %c0_16 = arith.constant 0 : index
    %c0_17 = arith.constant 0 : index
    %26 = vector.load %arg7[%c0_16, %c0_17] : memref<8x256xf32, #tpu.memory_space<vmem>>, vector<8x256xf32>
    tpu.vector_store %arg7[%c0_16, %c0_17], %25 {strides = array<i32>} : memref<8x256xf32, #tpu.memory_space<vmem>>, vector<8x256xf32>,
    return
  }
  func.func @transform_0(%arg0: i32, %arg1: i32) -> (i32, i32, i32) {
    %c0_i32 = arith.constant 0 : i32
    %c0_i32_0 = arith.constant 0 : i32
    return %arg1, %c0_i32, %arg0 : i32, i32, i32
  }
  func.func @transform_1(%arg0: i32, %arg1: i32) -> (i32, i32) {
    %c0_i32 = arith.constant 0 : i32
    %c0_i32_0 = arith.constant 0 : i32
    %c0_i32_1 = arith.constant 0 : i32
    return %c0_i32, %c0_i32_0 : i32, i32
  }
  func.func @transform_2(%arg0: i32, %arg1: i32) -> (i32, i32) {
    %c0_i32 = arith.constant 0 : i32
    %c0_i32_0 = arith.constant 0 : i32
    %c0_i32_1 = arith.constant 0 : i32
    return %c0_i32, %c0_i32_0 : i32, i32
  }
  func.func @transform_3(%arg0: i32, %arg1: i32) -> (i32, i32) {
    %c0_i32 = arith.constant 0 : i32
    %c0_i32_0 = arith.constant 0 : i32
    %c0_i32_1 = arith.constant 0 : i32
    return %c0_i32, %c0_i32_0 : i32, i32
  }
  func.func @transform_4(%arg0: i32, %arg1: i32) -> (i32, i32, i32) {
    %c0_i32 = arith.constant 0 : i32
    %c0_i32_0 = arith.constant 0 : i32
    return %arg1, %arg0, %c0_i32 : i32, i32, i32
  }
}

module attributes {stable_mosaic.version = 11 : i64} {
  func.func @_lif_conv_kernel(%arg0: i32, %arg1: i32, %arg2: memref<1x72x128xbf16, #tpu.memory_space<vmem>>, %arg3: memref<16x72xbf16, #tpu.memory_space<vmem>>, %arg4: memref<16x1xf32, #tpu.memory_space<vmem>>, %arg5: memref<16x1xf32, #tpu.memory_space<vmem>>, %arg6: memref<1x16x128xbf16, #tpu.memory_space<vmem>>, %arg7: memref<16x128xf32, #tpu.memory_space<vmem>>) attributes {dimension_semantics = [#tpu.dimension_semantics<parallel>, #tpu.dimension_semantics<arbitrary>], iteration_bounds = array<i64: 1, 4>, scalar_prefetch = 0 : i64, scratch_operands = 1 : i64, tpu.core_type = #tpu.core_type<tc>, window_params = [{transform_indices = @transform_0, window_bounds = array<i64: 1, 72, 128>}, {pipeline_mode = #tpu.pipeline_mode<synchronous>, transform_indices = @transform_1, window_bounds = array<i64: 16, 72>}, {pipeline_mode = #tpu.pipeline_mode<synchronous>, transform_indices = @transform_2, window_bounds = array<i64: 16, 1>}, {pipeline_mode = #tpu.pipeline_mode<synchronous>, transform_indices = @transform_3, window_bounds = array<i64: 16, 1>}, {transform_indices = @transform_4, window_bounds = array<i64: 1, 16, 128>}]} {
    %c0_i32 = arith.constant 0 : i32
    %0 = arith.cmpi eq, %arg1, %c0_i32 : i32
    %1 = arith.extui %0 : i1 to i32
    %c0_i32_0 = arith.constant 0 : i32
    %2 = arith.cmpi ne, %1, %c0_i32_0 : i32
    scf.if %2 {
      %cst_18 = arith.constant 0.000000e+00 : f32
      %27 = vector.broadcast %cst_18 : f32 to vector<16x128xf32>
      %c0_19 = arith.constant 0 : index
      %c0_20 = arith.constant 0 : index
      %28 = vector.load %arg7[%c0_19, %c0_20] : memref<16x128xf32, #tpu.memory_space<vmem>>, vector<16x128xf32>
      tpu.vector_store %arg7[%c0_19, %c0_20], %27 {strides = array<i32>} : memref<16x128xf32, #tpu.memory_space<vmem>>, vector<16x128xf32>,
    } else {
    }
    %c0 = arith.constant 0 : index
    %c0_1 = arith.constant 0 : index
    %3 = vector.load %arg3[%c0, %c0_1] : memref<16x72xbf16, #tpu.memory_space<vmem>>, vector<16x72xbf16>
    %c0_2 = arith.constant 0 : index
    %c0_3 = arith.constant 0 : index
    %c0_4 = arith.constant 0 : index
    %4 = vector.load %arg2[%c0_2, %c0_3, %c0_4] : memref<1x72x128xbf16, #tpu.memory_space<vmem>>, vector<1x72x128xbf16>
    %5 = vector.shape_cast %4 : vector<1x72x128xbf16> to vector<72x128xbf16>
    %cst = arith.constant dense<0.000000e+00> : vector<16x128xf32>
    %6 = tpu.matmul %3, %5, %cst {dimension_numbers = #tpu.dot_dimension_numbers<[1], [0], [0], [1], [0, 0, 1, 1], [], []>} : vector<16x72xbf16>, vector<72x128xbf16>, vector<16x128xf32> -> vector<16x128xf32>
    %c0_5 = arith.constant 0 : index
    %c0_6 = arith.constant 0 : index
    %7 = vector.load %arg7[%c0_5, %c0_6] : memref<16x128xf32, #tpu.memory_space<vmem>>, vector<16x128xf32>
    %cst_7 = arith.constant 0.699999988 : f32
    %8 = vector.broadcast %cst_7 : f32 to vector<16x128xf32>
    %9 = arith.mulf %8, %7 : vector<16x128xf32>
    %cst_8 = arith.constant 3.000000e-01 : f32
    %10 = vector.broadcast %cst_8 : f32 to vector<16x128xf32>
    %11 = arith.mulf %10, %6 : vector<16x128xf32>
    %12 = arith.addf %9, %11 : vector<16x128xf32>
    %c0_9 = arith.constant 0 : index
    %c0_10 = arith.constant 0 : index
    %13 = vector.load %arg4[%c0_9, %c0_10] : memref<16x1xf32, #tpu.memory_space<vmem>>, vector<16x1xf32>
    %14 = vector.broadcast %13 : vector<16x1xf32> to vector<16x128xf32>
    %15 = arith.cmpf ogt, %12, %14 : vector<16x128xf32>
    %16 = arith.extui %15 : vector<16x128xi1> to vector<16x128xi32>
    %17 = arith.sitofp %16 : vector<16x128xi32> to vector<16x128xf32>
    %18 = arith.truncf %17 : vector<16x128xf32> to vector<16x128xbf16>
    %c0_11 = arith.constant 0 : index
    %c0_12 = arith.constant 0 : index
    %c0_13 = arith.constant 0 : index
    %19 = vector.load %arg6[%c0_11, %c0_12, %c0_13] : memref<1x16x128xbf16, #tpu.memory_space<vmem>>, vector<1x16x128xbf16>
    %20 = vector.shape_cast %19 : vector<1x16x128xbf16> to vector<16x128xbf16>
    %21 = vector.shape_cast %18 : vector<16x128xbf16> to vector<1x16x128xbf16>
    tpu.vector_store %arg6[%c0_11, %c0_12, %c0_13], %21 {strides = array<i32>} : memref<1x16x128xbf16, #tpu.memory_space<vmem>>, vector<1x16x128xbf16>,
    %c0_14 = arith.constant 0 : index
    %c0_15 = arith.constant 0 : index
    %22 = vector.load %arg5[%c0_14, %c0_15] : memref<16x1xf32, #tpu.memory_space<vmem>>, vector<16x1xf32>
    %23 = vector.broadcast %22 : vector<16x1xf32> to vector<16x128xf32>
    %24 = arith.mulf %17, %23 : vector<16x128xf32>
    %25 = arith.subf %12, %24 : vector<16x128xf32>
    %c0_16 = arith.constant 0 : index
    %c0_17 = arith.constant 0 : index
    %26 = vector.load %arg7[%c0_16, %c0_17] : memref<16x128xf32, #tpu.memory_space<vmem>>, vector<16x128xf32>
    tpu.vector_store %arg7[%c0_16, %c0_17], %25 {strides = array<i32>} : memref<16x128xf32, #tpu.memory_space<vmem>>, vector<16x128xf32>,
    return
  }
  func.func @transform_0(%arg0: i32, %arg1: i32) -> (i32, i32, i32) {
    %c0_i32 = arith.constant 0 : i32
    %c0_i32_0 = arith.constant 0 : i32
    return %arg1, %c0_i32, %arg0 : i32, i32, i32
  }
  func.func @transform_1(%arg0: i32, %arg1: i32) -> (i32, i32) {
    %c0_i32 = arith.constant 0 : i32
    %c0_i32_0 = arith.constant 0 : i32
    %c0_i32_1 = arith.constant 0 : i32
    return %c0_i32, %c0_i32_0 : i32, i32
  }
  func.func @transform_2(%arg0: i32, %arg1: i32) -> (i32, i32) {
    %c0_i32 = arith.constant 0 : i32
    %c0_i32_0 = arith.constant 0 : i32
    %c0_i32_1 = arith.constant 0 : i32
    return %c0_i32, %c0_i32_0 : i32, i32
  }
  func.func @transform_3(%arg0: i32, %arg1: i32) -> (i32, i32) {
    %c0_i32 = arith.constant 0 : i32
    %c0_i32_0 = arith.constant 0 : i32
    %c0_i32_1 = arith.constant 0 : i32
    return %c0_i32, %c0_i32_0 : i32, i32
  }
  func.func @transform_4(%arg0: i32, %arg1: i32) -> (i32, i32, i32) {
    %c0_i32 = arith.constant 0 : i32
    %c0_i32_0 = arith.constant 0 : i32
    return %arg1, %arg0, %c0_i32 : i32, i32, i32
  }
}

module attributes {stable_mosaic.version = 11 : i64} {
  func.func @_readout_kernel(%arg0: i32, %arg1: memref<8x576xf32, #tpu.memory_space<vmem>>, %arg2: memref<576x11xf32, #tpu.memory_space<vmem>>, %arg3: memref<1x11xf32, #tpu.memory_space<vmem>>, %arg4: memref<8x11xf32, #tpu.memory_space<vmem>>) attributes {dimension_semantics = [#tpu.dimension_semantics<arbitrary>], iteration_bounds = array<i64: 1>, scalar_prefetch = 0 : i64, scratch_operands = 0 : i64, tpu.core_type = #tpu.core_type<tc>, window_params = [{pipeline_mode = #tpu.pipeline_mode<synchronous>, transform_indices = @transform_0, window_bounds = array<i64: 8, 576>}, {pipeline_mode = #tpu.pipeline_mode<synchronous>, transform_indices = @transform_1, window_bounds = array<i64: 576, 11>}, {pipeline_mode = #tpu.pipeline_mode<synchronous>, transform_indices = @transform_2, window_bounds = array<i64: 1, 11>}, {pipeline_mode = #tpu.pipeline_mode<synchronous>, transform_indices = @transform_3, window_bounds = array<i64: 8, 11>}]} {
    %c0 = arith.constant 0 : index
    %c0_0 = arith.constant 0 : index
    %0 = vector.load %arg1[%c0, %c0_0] : memref<8x576xf32, #tpu.memory_space<vmem>>, vector<8x576xf32>
    %c0_1 = arith.constant 0 : index
    %c0_2 = arith.constant 0 : index
    %1 = vector.load %arg2[%c0_1, %c0_2] : memref<576x11xf32, #tpu.memory_space<vmem>>, vector<576x11xf32>
    %cst = arith.constant dense<0.000000e+00> : vector<8x11xf32>
    %2 = tpu.matmul %0, %1, %cst {dimension_numbers = #tpu.dot_dimension_numbers<[1], [0], [0], [1], [0, 0, 1, 1], [], []>} : vector<8x576xf32>, vector<576x11xf32>, vector<8x11xf32> -> vector<8x11xf32>
    %c0_3 = arith.constant 0 : index
    %c0_4 = arith.constant 0 : index
    %3 = vector.load %arg3[%c0_3, %c0_4] : memref<1x11xf32, #tpu.memory_space<vmem>>, vector<1x11xf32>
    %4 = vector.broadcast %3 : vector<1x11xf32> to vector<8x11xf32>
    %5 = arith.subf %2, %4 : vector<8x11xf32>
    %c0_5 = arith.constant 0 : index
    %c0_6 = arith.constant 0 : index
    %6 = vector.load %arg4[%c0_5, %c0_6] : memref<8x11xf32, #tpu.memory_space<vmem>>, vector<8x11xf32>
    tpu.vector_store %arg4[%c0_5, %c0_6], %5 {strides = array<i32>} : memref<8x11xf32, #tpu.memory_space<vmem>>, vector<8x11xf32>,
    return
  }
  func.func @transform_0(%arg0: i32) -> (i32, i32) {
    %c0_i32 = arith.constant 0 : i32
    %c0_i32_0 = arith.constant 0 : i32
    %c0_i32_1 = arith.constant 0 : i32
    return %c0_i32, %c0_i32_0 : i32, i32
  }
  func.func @transform_1(%arg0: i32) -> (i32, i32) {
    %c0_i32 = arith.constant 0 : i32
    %c0_i32_0 = arith.constant 0 : i32
    %c0_i32_1 = arith.constant 0 : i32
    return %c0_i32, %c0_i32_0 : i32, i32
  }
  func.func @transform_2(%arg0: i32) -> (i32, i32) {
    %c0_i32 = arith.constant 0 : i32
    %c0_i32_0 = arith.constant 0 : i32
    %c0_i32_1 = arith.constant 0 : i32
    return %c0_i32, %c0_i32_0 : i32, i32
  }
  func.func @transform_3(%arg0: i32) -> (i32, i32) {
    %c0_i32 = arith.constant 0 : i32
    %c0_i32_0 = arith.constant 0 : i32
    %c0_i32_1 = arith.constant 0 : i32
    return %c0_i32, %c0_i32_0 : i32, i32
  }
}

</mosaic_0001>

<bundles_post_ra>
// kernel: _lambda_.5
= control target key start
LH: loop header
LB: loop body
LE: loop exit
PB: predicated region body
PF: predicated region fallthrough
CT: control target
= control target key end

     0   :  { %s789_s15 = smov 0   ;;  %s791_s16 = smov 0   ;;  %s893_s0 = inlined_call_operand.vmem [shape: bf16[4,25,8192], index: 0, kind: input, shape index: {}]   ;;  %s894_s1 = inlined_call_operand.vmem [shape: bf16[4,25], index: 1, kind: input, shape index: {}]   ;;  %s895_s2 = inlined_call_operand.vmem [shape: f32[4,1], index: 2, kind: input, shape index: {}]   ;;  %s896_s3 = inlined_call_operand.vmem [shape: f32[4,1], index: 3, kind: input, shape index: {}]   ;;  %s897_s4 = inlined_call_operand.vmem [shape: bf16[4,4,8192], index: 4, kind: output, shape index: {}]  }
   0x1   :  { %s793_s17 = smov 0   ;;  %s795_s18 = smov 0  }
   0x2   :  { %s797_s19 = smov 0   ;;  %s799_s20 = smov 0  }
   0x3   :  { %s801_s21 = smov 0  }
   0x4 LB: > { %s23_s22 = sadd.s32 1, %s748_s19  ;;  %s26_s23 = sadd.s32 1, %s752_s20  ;;  %s756_s21 = sphi %s801_s21, %s14_s21   ;;  %s752_s20 = sphi %s799_s20, %s903_s20   ;;  %s748_s19 = sphi %s797_s19, %s902_s19   ;;  %s744_s18 = sphi %s795_s18, %s901_s18   ;;  %s740_s17 = sphi %s793_s17, %s900_s17   ;;  %s736_s16 = sphi %s791_s16, %s899_s16   ;;  %s732_s15 = sphi %s789_s15, %s898_s15  }
   0x5   : > { %p24_p0 = scmp.ge.s32.totalorder %s23_s22, 4  ;;  %p42_p1 = scmp.ne.s32.totalorder %s736_s16, %s732_s15 }
   0x6   : > { %p43_p2 = scmp.eq.s32.totalorder %s756_s21, 0  ;;  %s35_s27 = sadd.s32 1, %s736_s16 }
   0x7   : > { %s905_s22 = smov (%p24_p0, %s23_s22), 0  ;;  %s907_s23 = smov (!%p24_p0, %s26_s23), %s752_s20 }
   0x8   : > { %p44_p3 = por %p43_p2, %p42_p1  ;;  %p28_p4 = scmp.ge.s32.totalorder %s907_s23, 16 }
   0x9   : > { %s30_s24 = ssub.s32 %s748_s19, %s905_s22  ;;  %p600_p6 = scmp.ge.s32.totalorder %s756_s21, 64 }
   0xa   : > { %s909_s23 = smov (%p28_p4, %s907_s23), 0 }
   0xb   : > { %s31_s25 = ssub.s32 %s752_s20, %s909_s23  ;;  %168 = sbr.rel (%p600_p6) target bundleno = 29 (0x1d), region = 28 }
   0xc   : > { %s32_s26 = sor.u32 %s31_s25, %s30_s24 }
   0xd   : > { %p33_p5 = scmp.eq.s32.totalorder %s32_s26, 0 }
   0xf   : > { %s840_s28 = scalar_select %p33_p5, %s736_s16, %s35_s27  }
  0x12   : > { %171 = sbr.rel (!%p44_p3) target bundleno = 29 (0x1d), region = 32  ;;  %s173_s29 = sand.u32 (%p44_p3), 1, %s736_s16  }
  0x13   : > { %s602_s30 = sshll.u32 (%p44_p3), %s752_s20, 2  ;;  %s601_s5 = sshll.u32 (%p44_p3), %s173_s29, 6 }
  0x14   : > { %s603_s6 = sshll.u32 (%p44_p3), %s748_s19, 8  ;;  %s175_s12 = scalar_lea.vmem (%p44_p3), [#allocation3], %s601_s5 }
  0x15   : > { %s178_s7 = sadd.s32 (%p44_p3), %s603_s6, %s602_s30 }
  0x16   : > { %s604_s8 = sshll.u32 (%p44_p3), %s178_s7, 2 }
  0x17   : > { %s180_s11 = scalar_lea.vmem (%p44_p3), %s893_s0, %s604_s8 }
  0x18   : > { %v193_v0 = vld [vmem:[%s180_s11] sm:$0xff] (%p44_p3)  ;;  %v195_v1 = vld [vmem:[%s180_s11 + $0x8] sm:$0xff] (%p44_p3) }
  0x19   : > { %v197_v2 = vld [vmem:[%s180_s11 + $0x100] sm:$0xff]  ;;  %194 = vst [vmem:[%s175_s12] sm:$0xff] %v193_v0  ;;  %196 = vst [vmem:[%s175_s12 + $0x8] sm:$0xff] %v195_v1  ;;  %v199_v3 = vld [vmem:[%s180_s11 + $0x108] sm:$0xff] }
  0x1a   : > { %198 = vst [vmem:[%s175_s12 + $0x10] sm:$0xff] %v197_v2  ;;  %v201_v4 = vld [vmem:[%s180_s11 + $0x200] sm:$0xff]  ;;  %v203_v5 = vld [vmem:[%s180_s11 + $0x208] sm:$0xff]  ;;  %200 = vst [vmem:[%s175_s12 + $0x18] sm:$0xff] %v199_v3 }
  0x1b   : > { %202 = vst [vmem:[%s175_s12 + $0x20] sm:$0xff] %v201_v4  ;;  %204 = vst [vmem:[%s175_s12 + $0x28] sm:$0xff] %v203_v5  ;;  %v205_v6 = vld [vmem:[%s180_s11 + $0x300] sm:$0xff]  ;;  %v207_v7 = vld [vmem:[%s180_s11 + $0x308] sm:$0xff] }
  0x1c   : > { %206 = vst [vmem:[%s175_s12 + $0x30] sm:$0xff] %v205_v6  ;;  %208 = vst [vmem:[%s175_s12 + $0x38] sm:$0xff] %v207_v7 }
  0x1d PF: > { %p605_p7 = scmp.ge.s32.totalorder %s756_s21, 1  ;;  %p213_p8 = scmp.lt.s32.totalorder %s756_s21, 65 }
  0x1f   : > { %p214_p9 = pnand %p605_p7, %p213_p8 }
  0x20   : > { %s220_s13 = sand.u32 (!%p214_p9), 1, %s732_s15   ;;  %p250_p10 = scmp.lt.s32.totalorder (!%p214_p9), %s740_s17, 3 }
  0x21   : > { %217 = sbr.rel (%p214_p9) target bundleno = 288 (0x120), region = 55  ;;  %s606_s14 = sshll.u32 (!%p214_p9), %s220_s13, 6 }
  0x22   : > { %p252_p11 = scmp.lt.s32.totalorder (!%p214_p9), %s744_s18, 0  ;;  %s222_s7 = scalar_lea.vmem (!%p214_p9), [#allocation3], %s606_s14 }
  0x23   : > { %p610_p12 = scmp.ne.s32.totalorder (!%p214_p9), %s740_s17, 0 }
  0x28   : > { %s251_s24 = scalar_select %p250_p10, %s740_s17, 3 }
  0x29   : > { %s911_s18 = smov (!%p252_p11, %s744_s18), 0  ;;  %263 = sbr.rel (%p610_p12) target bundleno = 48 (0x30), region = 63 }
  0x2a   : > { %s608_s25 = sshll.u32 %s251_s24, 6  ;;  %s607_s26 = sshll.u32 %s911_s18, 6  ;;  %v758_v8 = vmov (!%p610_p12), 0.0  }
  0x2b   : > { %s256_s27 = sadd.s32 %s608_s25, %s607_s26  ;;  %264 = vst [vmem:[#allocation2] sm:$0xff] (!%p610_p12), %v758_v8  ;;  %265 = vst [vmem:[#allocation2 + $0x8] sm:$0xff] (!%p610_p12), %v758_v8 }
  0x2c   : > { %s609_s29 = sshll.u32 %s256_s27, 1 }
  0x2d   : > { %s859_s6 = scalar_lea.vmem %s897_s4, %s609_s29 }
  0x30 PF: > { %v690_v9 = vld [vmem:[%s222_s7 + $0x4] ss:$16 sps:$4 sm:$0xff]   ;;  %vm315_vm0 = vcmask 1043456   ;;  %vm316_vm1 = vcmask 1044480   ;;  %v692_v10 = vld [vmem:[%s222_s7 + $0xc] ss:$16 sps:$4 sm:$0xff]   ;;  %v439_v30 = vlaneseq }
  0x31   : > { %331 = vmatprep.subr.bf16.mxu0 %v690_v9  ;;  %v694_v11 = vld [vmem:[%s222_s7] ss:$16 sps:$4 sm:$0xff]   ;;  %v695_v12 = vld [vmem:[%s222_s7 + $0x8] ss:$16 sps:$4 sm:$0xff]   ;;  %v759_v13 = vmov 65535   ;;  %v760_v15 = vmov 0   ;;  %372 = vmatprep.subr.bf16.mxu1 %v692_v10 }
  0x32   : > { %v317_v14 = vsel %vm315_vm0, 4294967295, %v759_v13  ;;  %363 = vmatprep.mubr.bf16.mxu0 %v760_v15  ;;  %v696_v16 = vld [vmem:[%s222_s7 + $0x24] ss:$16 sps:$4 sm:$0x1f]   ;;  %404 = vmatprep.mubr.bf16.mxu1 %v760_v15  ;;  %v431_v23 = vld [vmem:[%s895_s2] sm:$0xf] }
  0x33   : > { %v318_v17 = vsel %vm316_vm1, %v317_v14, 0  ;;  %332 = vmatpush1.bf16.msra.mxu0 %v694_v11  ;;  %373 = vmatpush1.bf16.msra.mxu1 %v695_v12  ;;  %v698_v18 = vld [vmem:[%s222_s7 + $0x2c] ss:$16 sps:$4 sm:$0x1f]   ;;  %v483_v26 = vld [vmem:[%s896_s3] sm:$0xf] }
  0x34   : > { %v323_v19 = vand.u32 %v696_v16, %v318_v17  ;;  %v700_v20 = vld [vmem:[%s222_s7 + $0x20] ss:$16 sps:$4 sm:$0x1f]   ;;  %v701_v21 = vld [vmem:[%s222_s7 + $0x28] ss:$16 sps:$4 sm:$0x1f]   ;;  %689 = vset.pattern.permute.xlu0 %v760_v15  ;;  %v329_v22 = vand.u32 %v698_v18, %v318_v17 }
  0x35   : > { %v320_v24 = vand.u32 %v700_v20, %v318_v17  ;;  %v326_v25 = vand.u32 %v701_v21, %v318_v17  ;;  %434 = vperm.xlu0 %689, %v431_v23   ;;  %v266_v27 = vld [vmem:[%s894_s1] sm:$0x3]  ;;  %vm311_vm2 = vcmask 203776   ;;  %v761_v28 = vmov 839922192   ;;  %v414_v34 = vld [vmem:[#allocation2 + $0x8] sm:$0xff] }
  0x36   : > { %333 = vmatprep.subr.bf16.mxu0 %v323_v19  ;;  %374 = vmatprep.subr.bf16.mxu1 %v329_v22  ;;  %v437_v29 = vunpack.c.l.s4 %v761_v28  ;;  %v440_v32 = vshrl.u32 %v439_v30, 7  ;;  %v413_v33 = vld [vmem:[#allocation2] sm:$0xff]  ;;  %v416_v40 = vmul.f32 0.7, %v414_v34  ;;  %v762_v43 = vmov 1983009808  }
  0x37   : > { %334 = vmatpush1.bf16.msra.mxu0 %v320_v24  ;;  %375 = vmatpush1.bf16.msra.mxu1 %v326_v25  ;;  %v415_v39 = vmul.f32 0.7, %v413_v33  ;;  %v467_v44 = vunpack.c.l.s4 %v762_v43  ;;  %v763_v62 = vmov 0.0  }
  0x38   : > { %v438_v31 = vunpack.c.0.s8 %v437_v29 }
  0x39   : > { %486 = vperm.xlu0 %689, %v483_v26   ;;  %v468_v56 = vunpack.c.0.s8 %v467_v44 }
  0x3a   : > { %619 = vmatmul.mubr.msk.bf16.vlgmr.msra.gmra.mrb[0].mxu0 %vm311_vm2, %v266_v27  ;;  %620 = vmatmul.mubr.msk.bf16.vlgmr.msra.gmra.mrb[0].mxu1 %vm311_vm2, %v266_v27  ;;  %v441_v38 = vsub.s32 %v438_v31, %v440_v32 }
  0x3b   : > { %v471_v61 = vsub.s32 %v468_v56, %v440_v32 }
  0xb4   : > { %v435_v35 = vpop.permute.xlu0 %434 }
  0xb5   : > { %v442_v53 = vrot.slane %v435_v35, %v441_v38 }
  0xb8   : > { %v487_v57 = vpop.permute.xlu0 %486 }
  0xb9   : > { %v494_v60 = vrot.slane %v487_v57, %v441_v38 }
 0x10d   : > { %v365_v36 = vpop.f32.mrb[0].mxu0  ;;  %v406_v37 = vpop.f32.mrb[0].mxu1 }
 0x10e   : > { %v417_v41 = vmul.f32 0.3, %v365_v36  ;;  %v419_v42 = vmul.f32 0.3, %v406_v37  ;;  %v367_v45 = vpop.f32.mrb[1].mxu0  ;;  %v408_v46 = vpop.f32.mrb[1].mxu1 }
 0x10f   : > { %v418_v47 = vmul.f32 0.3, %v367_v45  ;;  %v420_v48 = vmul.f32 0.3, %v408_v46  ;;  %v369_v49 = vpop.f32.mrb[2].mxu0  ;;  %v410_v50 = vpop.f32.mrb[2].mxu1 }
 0x110   : > { %v370_v51 = vpop.f32.mrb[3].mxu0  ;;  %v411_v52 = vpop.f32.mrb[3].mxu1 }
 0x111   : > { %v425_v54 = vcombine.low %v417_v41, %v418_v47  ;;  %v426_v55 = vcombine.low %v419_v42, %v420_v48 }
 0x113   : > { %v429_v58 = vadd.f32 %v425_v54, %v415_v39  ;;  %v430_v59 = vadd.f32 %v426_v55, %v416_v40 }
 0x115   : > { %vm444_vm3 = vcmp.gt.f32.partialorder %v429_v58, %v442_v53  ;;  %vm445_vm4 = vcmp.gt.f32.partialorder %v430_v59, %v442_v53 }
 0x116   : > { %v621_v63 = vsel %vm444_vm3, 1.0, %v763_v62  ;;  %v622_v0 = vsel %vm445_vm4, 1.0, %v763_v62 }
 0x117   : > { %v452_v1 = vcombine.high %v621_v63, %v621_v63  ;;  %v453_v2 = vcombine.high %v622_v0, %v622_v0  ;;  %v496_v3 = vmul.f32 %v621_v63, %v494_v60  ;;  %v497_v4 = vmul.f32 %v622_v0, %v494_v60 }
 0x119   : > { %v623_v5 = vpack.c.bf16 %v452_v1, %v621_v63  ;;  %v624_v6 = vpack.c.bf16 %v453_v2, %v622_v0  ;;  %v498_v7 = vsub.f32 %v429_v58, %v496_v3  ;;  %v499_v8 = vsub.f32 %v430_v59, %v497_v4 }
 0x11b   : > { %v472_v9 = vrot.slane %v623_v5, %v471_v61  ;;  %v479_v10 = vrot.slane %v624_v6, %v471_v61  ;;  %500 = vst [vmem:[#allocation2] sm:$0xff] %v498_v7  ;;  %501 = vst [vmem:[#allocation2 + $0x8] sm:$0xff] %v499_v8 }
 0x11d   : > { %v480_v11 = vcombine.low %v472_v9, %v479_v10 }
 0x11f   : > { %482 = vst [vmem:[%s859_s6] sm:$0xff] %v480_v11 }
 0x120 PF: > { %s14_s21 = sadd.s32 1, %s756_s21   ;;  %s898_s15 = smov %s736_s16 }
 0x121   : > { %p11_p13 = scmp.ge.s32.totalorder %s14_s21, 66   ;;  %s899_s16 = smov %s840_s28 }
 0x122   : > { %s900_s17 = smov %s748_s19  ;;  %s901_s18 = smov %s752_s20 }
 0x123   : > { %s902_s19 = smov %s905_s22  ;;  %s903_s20 = smov %s909_s23 }
 0x124   :  { %13 = sbr.rel (!%p11_p13) target bundleno = 4 (0x4), region = 98 }

// kernel: _lambda_.6
= control target key start
LH: loop header
LB: loop body
LE: loop exit
PB: predicated region body
PF: predicated region fallthrough
CT: control target
= control target key end

     0   :  { %s965_s15 = smov 0   ;;  %s967_s16 = smov 0   ;;  %s1154_s0 = inlined_call_operand.vmem [shape: bf16[4,100,2048], index: 0, kind: input, shape index: {}]   ;;  %s1155_s1 = inlined_call_operand.vmem [shape: bf16[8,100], index: 1, kind: input, shape index: {}]   ;;  %s1156_s2 = inlined_call_operand.vmem [shape: f32[8,1], index: 2, kind: input, shape index: {}]   ;;  %s1157_s3 = inlined_call_operand.vmem [shape: f32[8,1], index: 3, kind: input, shape index: {}]   ;;  %s1158_s4 = inlined_call_operand.vmem [shape: bf16[4,8,2048], index: 4, kind: output, shape index: {}]  }
   0x1   :  { %s969_s17 = smov 0   ;;  %s971_s18 = smov 0  }
   0x2   :  { %s973_s19 = smov 0   ;;  %s975_s20 = smov 0  }
   0x3   :  { %s977_s21 = smov 0  }
   0x4 LB: > { %s23_s22 = sadd.s32 1, %s927_s19  ;;  %s26_s23 = sadd.s32 1, %s931_s20  ;;  %s935_s21 = sphi %s977_s21, %s14_s21   ;;  %s931_s20 = sphi %s975_s20, %s1164_s20   ;;  %s927_s19 = sphi %s973_s19, %s1163_s19   ;;  %s923_s18 = sphi %s971_s18, %s1162_s18   ;;  %s919_s17 = sphi %s969_s17, %s1161_s17   ;;  %s915_s16 = sphi %s967_s16, %s1160_s16   ;;  %s911_s15 = sphi %s965_s15, %s1159_s15  }
   0x5   : > { %p24_p0 = scmp.ge.s32.totalorder %s23_s22, 4  ;;  %p42_p1 = scmp.ne.s32.totalorder %s915_s16, %s911_s15 }
   0x6   : > { %p43_p2 = scmp.eq.s32.totalorder %s935_s21, 0  ;;  %s35_s27 = sadd.s32 1, %s915_s16 }
   0x7   : > { %s1166_s22 = smov (%p24_p0, %s23_s22), 0  ;;  %s1168_s23 = smov (!%p24_p0, %s26_s23), %s931_s20 }
   0x8   : > { %p44_p3 = por %p43_p2, %p42_p1  ;;  %p28_p4 = scmp.ge.s32.totalorder %s1168_s23, 4 }
   0x9   : > { %s30_s24 = ssub.s32 %s927_s19, %s1166_s22  ;;  %p728_p6 = scmp.ge.s32.totalorder %s935_s21, 16 }
   0xa   : > { %s1170_s23 = smov (%p28_p4, %s1168_s23), 0 }
   0xb   : > { %s31_s25 = ssub.s32 %s931_s20, %s1170_s23  ;;  %168 = sbr.rel (%p728_p6) target bundleno = 39 (0x27), region = 28 }
   0xc   : > { %s32_s26 = sor.u32 %s31_s25, %s30_s24 }
   0xd   : > { %p33_p5 = scmp.eq.s32.totalorder %s32_s26, 0 }
   0xf   : > { %s1016_s28 = scalar_select %p33_p5, %s915_s16, %s35_s27  }
  0x12   : > { %171 = sbr.rel (!%p44_p3) target bundleno = 39 (0x27), region = 32  ;;  %s173_s29 = sand.u32 (%p44_p3), 1, %s915_s16  }
  0x13   : > { %s778_s30 = smul.u32 (%p44_p3), 208, %s173_s29  ;;  %s729_s5 = sshll.u32 (%p44_p3), %s931_s20, 2 }
  0x14   : > { %s779_s6 = smul.u32 (%p44_p3), 208, %s927_s19 }
  0x15   : > { %s1030_s12 = scalar_lea.vmem (%p44_p3), [#allocation3], %s778_s30 }
  0x16   : > { %s178_s7 = sadd.s32 (%p44_p3), %s779_s6, %s729_s5 }
  0x17   : > { %s730_s8 = sshll.u32 (%p44_p3), %s178_s7, 2 }
  0x18   : > { %s1025_s11 = scalar_lea.vmem (%p44_p3), %s1154_s0, %s730_s8 }
  0x19   : > { %v193_v0 = vld [vmem:[%s1025_s11] sm:$0xff]  ;;  %v195_v1 = vld [vmem:[%s1025_s11 + $0x8] sm:$0xff] }
  0x1a   : > { %v197_v2 = vld [vmem:[%s1025_s11 + $0x40] sm:$0xff]  ;;  %194 = vst [vmem:[%s1030_s12] sm:$0xff] %v193_v0  ;;  %196 = vst [vmem:[%s1030_s12 + $0x8] sm:$0xff] %v195_v1  ;;  %v199_v3 = vld [vmem:[%s1025_s11 + $0x48] sm:$0xff] }
  0x1b   : > { %198 = vst [vmem:[%s1030_s12 + $0x10] sm:$0xff] %v197_v2  ;;  %v201_v4 = vld [vmem:[%s1025_s11 + $0x80] sm:$0xff]  ;;  %v203_v5 = vld [vmem:[%s1025_s11 + $0x88] sm:$0xff]  ;;  %200 = vst [vmem:[%s1030_s12 + $0x18] sm:$0xff] %v199_v3 }
  0x1c   : > { %202 = vst [vmem:[%s1030_s12 + $0x20] sm:$0xff] %v201_v4  ;;  %204 = vst [vmem:[%s1030_s12 + $0x28] sm:$0xff] %v203_v5  ;;  %v205_v6 = vld [vmem:[%s1025_s11 + $0xc0] sm:$0xff]  ;;  %v207_v7 = vld [vmem:[%s1025_s11 + $0xc8] sm:$0xff] }
  0x1d   : > { %v209_v8 = vld [vmem:[%s1025_s11 + $0x100] sm:$0xff]  ;;  %206 = vst [vmem:[%s1030_s12 + $0x30] sm:$0xff] %v205_v6  ;;  %208 = vst [vmem:[%s1030_s12 + $0x38] sm:$0xff] %v207_v7  ;;  %v211_v9 = vld [vmem:[%s1025_s11 + $0x108] sm:$0xff] }
  0x1e   : > { %210 = vst [vmem:[%s1030_s12 + $0x40] sm:$0xff] %v209_v8  ;;  %v213_v10 = vld [vmem:[%s1025_s11 + $0x140] sm:$0xff]  ;;  %v215_v11 = vld [vmem:[%s1025_s11 + $0x148] sm:$0xff]  ;;  %212 = vst [vmem:[%s1030_s12 + $0x48] sm:$0xff] %v211_v9 }
  0x1f   : > { %214 = vst [vmem:[%s1030_s12 + $0x50] sm:$0xff] %v213_v10  ;;  %216 = vst [vmem:[%s1030_s12 + $0x58] sm:$0xff] %v215_v11  ;;  %v217_v12 = vld [vmem:[%s1025_s11 + $0x180] sm:$0xff]  ;;  %v219_v13 = vld [vmem:[%s1025_s11 + $0x188] sm:$0xff] }
  0x20   : > { %v221_v14 = vld [vmem:[%s1025_s11 + $0x1c0] sm:$0xff]  ;;  %218 = vst [vmem:[%s1030_s12 + $0x60] sm:$0xff] %v217_v12  ;;  %220 = vst [vmem:[%s1030_s12 + $0x68] sm:$0xff] %v219_v13  ;;  %v223_v15 = vld [vmem:[%s1025_s11 + $0x1c8] sm:$0xff] }
  0x21   : > { %222 = vst [vmem:[%s1030_s12 + $0x70] sm:$0xff] %v221_v14  ;;  %v225_v16 = vld [vmem:[%s1025_s11 + $0x200] sm:$0xff]  ;;  %v227_v17 = vld [vmem:[%s1025_s11 + $0x208] sm:$0xff]  ;;  %224 = vst [vmem:[%s1030_s12 + $0x78] sm:$0xff] %v223_v15 }
  0x22   : > { %226 = vst [vmem:[%s1030_s12 + $0x80] sm:$0xff] %v225_v16  ;;  %228 = vst [vmem:[%s1030_s12 + $0x88] sm:$0xff] %v227_v17  ;;  %v229_v18 = vld [vmem:[%s1025_s11 + $0x240] sm:$0xff]  ;;  %v231_v19 = vld [vmem:[%s1025_s11 + $0x248] sm:$0xff] }
  0x23   : > { %v233_v20 = vld [vmem:[%s1025_s11 + $0x280] sm:$0xff]  ;;  %230 = vst [vmem:[%s1030_s12 + $0x90] sm:$0xff] %v229_v18  ;;  %232 = vst [vmem:[%s1030_s12 + $0x98] sm:$0xff] %v231_v19  ;;  %v235_v21 = vld [vmem:[%s1025_s11 + $0x288] sm:$0xff] }
  0x24   : > { %234 = vst [vmem:[%s1030_s12 + $0xa0] sm:$0xff] %v233_v20  ;;  %v237_v22 = vld [vmem:[%s1025_s11 + $0x2c0] sm:$0xff]  ;;  %v239_v23 = vld [vmem:[%s1025_s11 + $0x2c8] sm:$0xff]  ;;  %236 = vst [vmem:[%s1030_s12 + $0xa8] sm:$0xff] %v235_v21 }
  0x25   : > { %238 = vst [vmem:[%s1030_s12 + $0xb0] sm:$0xff] %v237_v22  ;;  %240 = vst [vmem:[%s1030_s12 + $0xb8] sm:$0xff] %v239_v23  ;;  %v241_v24 = vld [vmem:[%s1025_s11 + $0x300] sm:$0xff]  ;;  %v243_v25 = vld [vmem:[%s1025_s11 + $0x308] sm:$0xff] }
  0x26   : > { %242 = vst [vmem:[%s1030_s12 + $0xc0] sm:$0xff] %v241_v24  ;;  %244 = vst [vmem:[%s1030_s12 + $0xc8] sm:$0xff] %v243_v25 }
  0x27 PF: > { %p731_p7 = scmp.ge.s32.totalorder %s935_s21, 1  ;;  %p249_p8 = scmp.lt.s32.totalorder %s935_s21, 17 }
  0x29   : > { %p250_p9 = pnand %p731_p7, %p249_p8 }
  0x2a   : > { %s256_s13 = sand.u32 (!%p250_p9), 1, %s911_s15   ;;  %p286_p10 = scmp.lt.s32.totalorder (!%p250_p9), %s919_s17, 3 }
  0x2b   : > { %253 = sbr.rel (%p250_p9) target bundleno = 313 (0x139), region = 55  ;;  %p288_p11 = scmp.lt.s32.totalorder (!%p250_p9), %s923_s18, 0 }
  0x2c   : > { %s780_s14 = smul.u32 (!%p250_p9), 208, %s256_s13  ;;  %p735_p12 = scmp.ne.s32.totalorder (!%p250_p9), %s919_s17, 0 }
  0x2e   : > { %s1093_s7 = scalar_lea.vmem (!%p250_p9), [#allocation3], %s780_s14 }
  0x32   : > { %s287_s24 = scalar_select %p286_p10, %s919_s17, 3 }
  0x33   : > { %s1172_s18 = smov (!%p288_p11, %s923_s18), 0  ;;  %299 = sbr.rel (%p735_p12) target bundleno = 58 (0x3a), region = 63 }
  0x34   : > { %s733_s25 = sshll.u32 %s287_s24, 4  ;;  %s732_s26 = sshll.u32 %s1172_s18, 4  ;;  %v937_v26 = vmov (!%p735_p12), 0.0  }
  0x35   : > { %s292_s27 = sadd.s32 %s733_s25, %s732_s26  ;;  %300 = vst [vmem:[#allocation2] sm:$0xff] (!%p735_p12), %v937_v26  ;;  %301 = vst [vmem:[#allocation2 + $0x8] sm:$0xff] (!%p735_p12), %v937_v26 }
  0x36   : > { %s734_s29 = sshll.u32 %s292_s27, 2  ;;  %302 = vst [vmem:[#allocation2 + $0x10] sm:$0xff] (!%p735_p12), %v937_v26  ;;  %303 = vst [vmem:[#allocation2 + $0x18] sm:$0xff] (!%p735_p12), %v937_v26 }
  0x37   : > { %s1091_s6 = scalar_lea.vmem %s1158_s4, %s734_s29 }
  0x3a PF: > { %v841_v27 = vld [vmem:[%s1093_s7 + $0x4] ss:$16 sps:$4 sm:$0xff]   ;;  %v843_v28 = vld [vmem:[%s1093_s7 + $0xc] ss:$16 sps:$4 sm:$0xff]   ;;  %v938_v29 = vmov 0   ;;  %vm465_vm0 = vcmask 1041408  }
  0x3b   : > { %510 = vmatprep.mubr.bf16.mxu0 %v938_v29  ;;  %551 = vmatprep.mubr.bf16.mxu1 %v938_v29  ;;  %v845_v30 = vld [vmem:[%s1093_s7] ss:$16 sps:$4 sm:$0xff]   ;;  %v846_v31 = vld [vmem:[%s1093_s7 + $0x8] ss:$16 sps:$4 sm:$0xff]   ;;  %v847_v32 = vld [vmem:[%s1093_s7 + $0x24] ss:$16 sps:$4 sm:$0xff]  }
  0x3c   : > { %478 = vmatprep.subr.bf16.mxu0 %v841_v27  ;;  %840 = vset.pattern.permute.xlu0 %v938_v29  ;;  %v849_v33 = vld [vmem:[%s1093_s7 + $0x2c] ss:$16 sps:$4 sm:$0xff]   ;;  %v851_v34 = vld [vmem:[%s1093_s7 + $0x20] ss:$16 sps:$4 sm:$0xff]   ;;  %v852_v35 = vld [vmem:[%s1093_s7 + $0x28] ss:$16 sps:$4 sm:$0xff]  }
  0x3d   : > { %519 = vmatprep.subr.bf16.mxu1 %v843_v28  ;;  %479 = vmatpush1.bf16.msra.mxu0 %v845_v30  ;;  %v853_v36 = vld [vmem:[%s1093_s7 + $0x44] ss:$16 sps:$4 sm:$0xff]   ;;  %v855_v37 = vld [vmem:[%s1093_s7 + $0x4c] ss:$16 sps:$4 sm:$0xff]   ;;  %v857_v38 = vld [vmem:[%s1093_s7 + $0x40] ss:$16 sps:$4 sm:$0xff]  }
  0x3e   : > { %520 = vmatpush1.bf16.msra.mxu1 %v846_v31  ;;  %480 = vmatprep.subr.bf16.mxu0 %v847_v32  ;;  %v858_v39 = vld [vmem:[%s1093_s7 + $0x48] ss:$16 sps:$4 sm:$0xff]   ;;  %v859_v40 = vld [vmem:[%s1093_s7 + $0x64] ss:$16 sps:$4 sm:$0xff]   ;;  %v861_v41 = vld [vmem:[%s1093_s7 + $0x6c] ss:$16 sps:$4 sm:$0xff]  }
  0x3f   : > { %521 = vmatprep.subr.bf16.mxu1 %v849_v33  ;;  %v863_v42 = vld [vmem:[%s1093_s7 + $0x60] ss:$16 sps:$4 sm:$0xff]   ;;  %v864_v43 = vld [vmem:[%s1093_s7 + $0x68] ss:$16 sps:$4 sm:$0xff]   ;;  %v865_v44 = vld [vmem:[%s1093_s7 + $0x84] ss:$16 sps:$4 sm:$0xff]  }
  0x40   : > { %v867_v45 = vld [vmem:[%s1093_s7 + $0x8c] ss:$16 sps:$4 sm:$0xff]   ;;  %v869_v46 = vld [vmem:[%s1093_s7 + $0x80] ss:$16 sps:$4 sm:$0xff]   ;;  %v870_v47 = vld [vmem:[%s1093_s7 + $0x88] ss:$16 sps:$4 sm:$0xff]  }
  0x41   : > { %481 = vmatpush1.bf16.msra.mxu0 %v851_v34  ;;  %v871_v48 = vld [vmem:[%s1093_s7 + $0xa4] ss:$16 sps:$4 sm:$0xff]   ;;  %v873_v49 = vld [vmem:[%s1093_s7 + $0xac] ss:$16 sps:$4 sm:$0xff]   ;;  %v875_v54 = vld [vmem:[%s1093_s7 + $0xa0] ss:$16 sps:$4 sm:$0xff]  }
  0x42   : > { %522 = vmatpush1.bf16.msra.mxu1 %v852_v35  ;;  %482 = vmatprep.subr.bf16.mxu0 %v853_v36  ;;  %v329_v50 = vld [vmem:[%s1093_s7 + $0xc0] sm:$0x33]  ;;  %v330_v52 = vld [vmem:[%s1093_s7 + $0xc8] sm:$0x33]  ;;  %vm461_vm1 = vcmask 818176   ;;  %v939_v25 = vmov 0.0  }
  0x43   : > { %523 = vmatprep.subr.bf16.mxu1 %v855_v37  ;;  %v576_v51 = vld [vmem:[%s1156_s2] sm:$0xff]  ;;  %v876_v55 = vld [vmem:[%s1093_s7 + $0xa8] ss:$16 sps:$4 sm:$0xff]   ;;  %v761_v56 = vcombine.high %v329_v50, %v329_v50  ;;  %v763_v57 = vcombine.high %v330_v52, %v330_v52  ;;  %v760_v58 = vcombine.low %v329_v50, %v329_v50  ;;  %v762_v59 = vcombine.low %v330_v52, %v330_v52  ;;  %v562_v0 = vld [vmem:[#allocation2 + $0x10] sm:$0xff] }
  0x44   : > { %579 = vperm.xlu0 %840, %v576_v51   ;;  %v612_v53 = vld [vmem:[%s1157_s3] sm:$0xff]  ;;  %v561_v1 = vld [vmem:[#allocation2 + $0x8] sm:$0xff]  ;;  %v563_v2 = vld [vmem:[#allocation2 + $0x18] sm:$0xff]  ;;  %v566_v5 = vmul.f32 0.7, %v562_v0 }
  0x45   : > { %483 = vmatpush1.bf16.msra.mxu0 %v857_v38  ;;  %v467_v60 = vsel %vm465_vm0, %v760_v58, 0  ;;  %v473_v61 = vsel %vm465_vm0, %v762_v59, 0  ;;  %v304_v62 = vld [vmem:[%s1155_s1] sm:$0xf]  ;;  %v565_v8 = vmul.f32 0.7, %v561_v1 }
  0x46   : > { %524 = vmatpush1.bf16.msra.mxu1 %v858_v39  ;;  %484 = vmatprep.subr.bf16.mxu0 %v859_v40  ;;  %v560_v63 = vld [vmem:[#allocation2] sm:$0xff]  ;;  %v567_v9 = vmul.f32 0.7, %v563_v2 }
  0x47   : > { %525 = vmatprep.subr.bf16.mxu1 %v861_v41  ;;  %v564_v4 = vmul.f32 0.7, %v560_v63 }
  0x48   : > { %615 = vperm.xlu0 %840, %v612_v53  }
  0x49   : > { %485 = vmatpush1.bf16.msra.mxu0 %v863_v42 }
  0x4a   : > { %526 = vmatpush1.bf16.msra.mxu1 %v864_v43  ;;  %486 = vmatprep.subr.bf16.mxu0 %v865_v44 }
  0x4b   : > { %527 = vmatprep.subr.bf16.mxu1 %v867_v45 }
  0x4d   : > { %487 = vmatpush1.bf16.msra.mxu0 %v869_v46 }
  0x4e   : > { %528 = vmatpush1.bf16.msra.mxu1 %v870_v47  ;;  %488 = vmatprep.subr.bf16.mxu0 %v871_v48 }
  0x4f   : > { %529 = vmatprep.subr.bf16.mxu1 %v873_v49 }
  0x51   : > { %489 = vmatpush1.bf16.msra.mxu0 %v875_v54 }
  0x52   : > { %530 = vmatpush1.bf16.msra.mxu1 %v876_v55  ;;  %764 = vmatprep.subr.msk.bf16.mxu0 %vm465_vm0, %v761_v56 }
  0x53   : > { %766 = vmatprep.subr.msk.bf16.mxu1 %vm465_vm0, %v763_v57 }
  0x55   : > { %491 = vmatpush1.bf16.msra.mxu0 %v467_v60 }
  0x56   : > { %532 = vmatpush1.bf16.msra.mxu1 %v473_v61 }
  0x58   : > { %765 = vmatmul.mubr.msk.bf16.vlgmr.msra.gmra.mrb[0].mxu0 %vm461_vm1, %v304_v62 }
  0x59   : > { %767 = vmatmul.mubr.msk.bf16.vlgmr.msra.gmra.mrb[0].mxu1 %vm461_vm1, %v304_v62 }
  0xc3   : > { %v580_v3 = vpop.permute.xlu0 %579 }
  0xc7   : > { %v616_v24 = vpop.permute.xlu0 %615 }
 0x12b   : > { %v512_v6 = vpop.f32.mrb[0].mxu0 }
 0x12c   : > { %v553_v7 = vpop.f32.mrb[0].mxu1  ;;  %v568_v10 = vmul.f32 0.3, %v512_v6  ;;  %v514_v12 = vpop.f32.mrb[1].mxu0 }
 0x12d   : > { %v570_v11 = vmul.f32 0.3, %v553_v7  ;;  %v555_v13 = vpop.f32.mrb[1].mxu1  ;;  %v569_v14 = vmul.f32 0.3, %v514_v12  ;;  %v516_v16 = vpop.f32.mrb[2].mxu0 }
 0x12e   : > { %v571_v15 = vmul.f32 0.3, %v555_v13  ;;  %v557_v17 = vpop.f32.mrb[2].mxu1  ;;  %v572_v18 = vadd.f32 %v568_v10, %v564_v4  ;;  %v517_v20 = vpop.f32.mrb[3].mxu0 }
 0x12f   : > { %v574_v19 = vadd.f32 %v570_v11, %v566_v5  ;;  %v558_v21 = vpop.f32.mrb[3].mxu1  ;;  %v573_v22 = vadd.f32 %v569_v14, %v565_v8 }
 0x130   : > { %v575_v23 = vadd.f32 %v571_v15, %v567_v9  ;;  %vm582_vm2 = vcmp.gt.f32.partialorder %v572_v18, %v580_v3 }
 0x131   : > { %vm584_vm3 = vcmp.gt.f32.partialorder %v574_v19, %v580_v3  ;;  %vm583_vm4 = vcmp.gt.f32.partialorder %v573_v22, %v580_v3  ;;  %v768_v26 = vsel %vm582_vm2, 1.0, %v939_v25 }
 0x132   : > { %vm585_vm5 = vcmp.gt.f32.partialorder %v575_v23, %v580_v3  ;;  %v770_v27 = vsel %vm584_vm3, 1.0, %v939_v25  ;;  %v769_v28 = vsel %vm583_vm4, 1.0, %v939_v25  ;;  %v618_v30 = vmul.f32 %v768_v26, %v616_v24 }
 0x133   : > { %v771_v29 = vsel %vm585_vm5, 1.0, %v939_v25  ;;  %v620_v31 = vmul.f32 %v770_v27, %v616_v24  ;;  %v776_v32 = vpack.c.bf16 %v769_v28, %v768_v26  ;;  %v619_v34 = vmul.f32 %v769_v28, %v616_v24 }
 0x134   : > { %v777_v33 = vpack.c.bf16 %v771_v29, %v770_v27  ;;  %v621_v35 = vmul.f32 %v771_v29, %v616_v24  ;;  %v622_v36 = vsub.f32 %v572_v18, %v618_v30 }
 0x135   : > { %v624_v37 = vsub.f32 %v574_v19, %v620_v31  ;;  %610 = vst [vmem:[%s1091_s6] sm:$0xff] %v776_v32  ;;  %v623_v38 = vsub.f32 %v573_v22, %v619_v34 }
 0x136   : > { %611 = vst [vmem:[%s1091_s6 + $0x8] sm:$0xff] %v777_v33  ;;  %v625_v39 = vsub.f32 %v575_v23, %v621_v35  ;;  %626 = vst [vmem:[#allocation2] sm:$0xff] %v622_v36 }
 0x137   : > { %628 = vst [vmem:[#allocation2 + $0x10] sm:$0xff] %v624_v37  ;;  %627 = vst [vmem:[#allocation2 + $0x8] sm:$0xff] %v623_v38 }
 0x138   : > { %629 = vst [vmem:[#allocation2 + $0x18] sm:$0xff] %v625_v39 }
 0x139 PF: > { %s14_s21 = sadd.s32 1, %s935_s21   ;;  %s1159_s15 = smov %s915_s16 }
 0x13a   : > { %p11_p13 = scmp.ge.s32.totalorder %s14_s21, 18   ;;  %s1160_s16 = smov %s1016_s28 }
 0x13b   : > { %s1161_s17 = smov %s927_s19  ;;  %s1162_s18 = smov %s931_s20 }
 0x13c   : > { %s1163_s19 = smov %s1166_s22  ;;  %s1164_s20 = smov %s1170_s23 }
 0x13d   :  { %13 = sbr.rel (!%p11_p13) target bundleno = 4 (0x4), region = 98 }

// kernel: _lambda_.7
= control target key start
LH: loop header
LB: loop body
LE: loop exit
PB: predicated region body
PF: predicated region fallthrough
CT: control target
= control target key end

     0   :  { %s732_s15 = smov 0   ;;  %s734_s16 = smov 0   ;;  %s836_s0 = inlined_call_operand.vmem [shape: bf16[4,72,512], index: 0, kind: input, shape index: {}]   ;;  %s837_s1 = inlined_call_operand.vmem [shape: bf16[8,72], index: 1, kind: input, shape index: {}]   ;;  %s838_s2 = inlined_call_operand.vmem [shape: f32[8,1], index: 2, kind: input, shape index: {}]   ;;  %s839_s3 = inlined_call_operand.vmem [shape: f32[8,1], index: 3, kind: input, shape index: {}]   ;;  %s840_s4 = inlined_call_operand.vmem [shape: bf16[4,8,512], index: 4, kind: output, shape index: {}]  }
   0x1   :  { %s736_s17 = smov 0   ;;  %s738_s18 = smov 0  }
   0x2   :  { %s740_s19 = smov 0   ;;  %s742_s20 = smov 0  }
   0x3   :  { %s744_s21 = smov 0  }
   0x4 LB: > { %s23_s22 = sadd.s32 1, %s694_s19  ;;  %s26_s23 = sadd.s32 1, %s698_s20  ;;  %s702_s21 = sphi %s744_s21, %s14_s21   ;;  %s698_s20 = sphi %s742_s20, %s846_s20   ;;  %s694_s19 = sphi %s740_s19, %s845_s19   ;;  %s690_s18 = sphi %s738_s18, %s844_s18   ;;  %s686_s17 = sphi %s736_s17, %s843_s17   ;;  %s682_s16 = sphi %s734_s16, %s842_s16   ;;  %s678_s15 = sphi %s732_s15, %s841_s15  }
   0x5   : > { %p24_p0 = scmp.ge.s32.totalorder %s23_s22, 4  ;;  %p42_p1 = scmp.ne.s32.totalorder %s682_s16, %s678_s15 }
   0x6   : > { %p43_p2 = scmp.eq.s32.totalorder %s702_s21, 0  ;;  %s35_s27 = sadd.s32 1, %s682_s16 }
   0x7   : > { %s848_s22 = smov (%p24_p0, %s23_s22), 0  ;;  %s850_s23 = smov (!%p24_p0, %s26_s23), %s698_s20 }
   0x8   : > { %p44_p3 = por %p43_p2, %p42_p1  ;;  %p28_p4 = scmp.ge.s32.totalorder %s850_s23, 2 }
   0x9   : > { %s30_s24 = ssub.s32 %s694_s19, %s848_s22  ;;  %p545_p6 = scmp.ge.s32.totalorder %s702_s21, 8 }
   0xa   : > { %s852_s23 = smov (%p28_p4, %s850_s23), 0 }
   0xb   : > { %s31_s25 = ssub.s32 %s698_s20, %s852_s23  ;;  %168 = sbr.rel (%p545_p6) target bundleno = 31 (0x1f), region = 28 }
   0xc   : > { %s32_s26 = sor.u32 %s31_s25, %s30_s24 }
   0xd   : > { %p33_p5 = scmp.eq.s32.totalorder %s32_s26, 0 }
   0xf   : > { %s783_s28 = scalar_select %p33_p5, %s682_s16, %s35_s27  }
  0x12   : > { %171 = sbr.rel (!%p44_p3) target bundleno = 31 (0x1f), region = 32  ;;  %s173_s29 = sand.u32 (%p44_p3), 1, %s682_s16  }
  0x13   : > { %s571_s30 = smul.u32 (%p44_p3), 72, %s173_s29  ;;  %s546_s5 = sshll.u32 (%p44_p3), %s698_s20, 1 }
  0x14   : > { %s572_s6 = smul.u32 (%p44_p3), 36, %s694_s19 }
  0x15   : > { %s175_s12 = scalar_lea.vmem (%p44_p3), [#allocation3], %s571_s30 }
  0x16   : > { %s178_s7 = sadd.s32 (%p44_p3), %s572_s6, %s546_s5 }
  0x17   : > { %s547_s8 = sshll.u32 (%p44_p3), %s178_s7, 2 }
  0x18   : > { %s180_s11 = scalar_lea.vmem (%p44_p3), %s836_s0, %s547_s8 }
  0x19   : > { %v224_v0 = vld [vmem:[%s180_s11] sm:$0xff]  ;;  %v226_v1 = vld [vmem:[%s180_s11 + $0x10] sm:$0xff] }
  0x1a   : > { %v228_v2 = vld [vmem:[%s180_s11 + $0x20] sm:$0xff]  ;;  %225 = vst [vmem:[%s175_s12] sm:$0xff] %v224_v0  ;;  %227 = vst [vmem:[%s175_s12 + $0x8] sm:$0xff] %v226_v1  ;;  %v230_v3 = vld [vmem:[%s180_s11 + $0x30] sm:$0xff] }
  0x1b   : > { %229 = vst [vmem:[%s175_s12 + $0x10] sm:$0xff] %v228_v2  ;;  %v232_v4 = vld [vmem:[%s180_s11 + $0x40] sm:$0xff]  ;;  %v234_v5 = vld [vmem:[%s180_s11 + $0x50] sm:$0xff]  ;;  %231 = vst [vmem:[%s175_s12 + $0x18] sm:$0xff] %v230_v3 }
  0x1c   : > { %233 = vst [vmem:[%s175_s12 + $0x20] sm:$0xff] %v232_v4  ;;  %235 = vst [vmem:[%s175_s12 + $0x28] sm:$0xff] %v234_v5  ;;  %v236_v6 = vld [vmem:[%s180_s11 + $0x60] sm:$0xff]  ;;  %v238_v7 = vld [vmem:[%s180_s11 + $0x70] sm:$0xff] }
  0x1d   : > { %v240_v8 = vld [vmem:[%s180_s11 + $0x80] sm:$0xff]  ;;  %237 = vst [vmem:[%s175_s12 + $0x30] sm:$0xff] %v236_v6  ;;  %239 = vst [vmem:[%s175_s12 + $0x38] sm:$0xff] %v238_v7 }
  0x1e   : > { %241 = vst [vmem:[%s175_s12 + $0x40] sm:$0xff] %v240_v8 }
  0x1f PF: > { %p548_p7 = scmp.ge.s32.totalorder %s702_s21, 1  ;;  %p246_p8 = scmp.lt.s32.totalorder %s702_s21, 9 }
  0x21   : > { %p247_p9 = pnand %p548_p7, %p246_p8 }
  0x22   : > { %s253_s13 = sand.u32 (!%p247_p9), 1, %s678_s15   ;;  %p283_p10 = scmp.lt.s32.totalorder (!%p247_p9), %s686_s17, 3 }
  0x23   : > { %250 = sbr.rel (%p247_p9) target bundleno = 296 (0x128), region = 70  ;;  %p285_p11 = scmp.lt.s32.totalorder (!%p247_p9), %s690_s18, 0 }
  0x24   : > { %s573_s14 = smul.u32 (!%p247_p9), 72, %s253_s13  ;;  %p552_p12 = scmp.ne.s32.totalorder (!%p247_p9), %s686_s17, 0 }
  0x26   : > { %s255_s7 = scalar_lea.vmem (!%p247_p9), [#allocation3], %s573_s14 }
  0x2a   : > { %s284_s24 = scalar_select %p283_p10, %s686_s17, 3 }
  0x2b   : > { %s854_s18 = smov (!%p285_p11, %s690_s18), 0  ;;  %296 = sbr.rel (%p552_p12) target bundleno = 50 (0x32), region = 78 }
  0x2c   : > { %s550_s25 = sshll.u32 %s284_s24, 2  ;;  %s549_s26 = sshll.u32 %s854_s18, 2  ;;  %v704_v9 = vmov (!%p552_p12), 0.0  }
  0x2d   : > { %s289_s27 = sadd.s32 %s550_s25, %s549_s26  ;;  %297 = vst [vmem:[#allocation2] sm:$0xff] (!%p552_p12), %v704_v9  ;;  %298 = vst [vmem:[#allocation2 + $0x8] sm:$0xff] (!%p552_p12), %v704_v9 }
  0x2e   : > { %s551_s29 = sshll.u32 %s289_s27, 2 }
  0x2f   : > { %s802_s6 = scalar_lea.vmem %s840_s4, %s551_s29 }
  0x32 PF: > { %v634_v10 = vld [vmem:[%s255_s7 + $0x4] ss:$8 sps:$4 sm:$0xff]   ;;  %v636_v11 = vld [vmem:[%s255_s7] ss:$8 sps:$4 sm:$0xff]   ;;  %v705_v12 = vmov 0   ;;  %vm358_vm0 = vcmask 1043456  }
  0x33   : > { %397 = vmatprep.mubr.bf16.mxu0 %v705_v12  ;;  %633 = vset.pattern.permute.xlu0 %v705_v12  ;;  %v637_v13 = vld [vmem:[%s255_s7 + $0x14] ss:$8 sps:$4 sm:$0xff]   ;;  %v639_v14 = vld [vmem:[%s255_s7 + $0x10] ss:$8 sps:$4 sm:$0xff]   ;;  %v640_v15 = vld [vmem:[%s255_s7 + $0x24] ss:$8 sps:$4 sm:$0xff]  }
  0x34   : > { %365 = vmatprep.subr.bf16.mxu0 %v634_v10  ;;  %v414_v16 = vld [vmem:[%s838_s2] sm:$0xff]  ;;  %v308_v20 = vld [vmem:[%s255_s7 + $0x40] sm:$0xff]  ;;  %vm354_vm1 = vcmask 588800   ;;  %v407_v27 = vld [vmem:[#allocation2 + $0x8] sm:$0xff]  ;;  %v706_v40 = vmov 0.0  }
  0x35   : > { %366 = vmatpush1.bf16.msra.mxu0 %v636_v11  ;;  %v642_v17 = vld [vmem:[%s255_s7 + $0x20] ss:$8 sps:$4 sm:$0xff]   ;;  %417 = vperm.xlu0 %633, %v414_v16   ;;  %v643_v18 = vld [vmem:[%s255_s7 + $0x34] ss:$8 sps:$4 sm:$0xff]   ;;  %v645_v21 = vld [vmem:[%s255_s7 + $0x30] ss:$8 sps:$4 sm:$0xff]   ;;  %v562_v22 = vcombine.high %v308_v20, %v308_v20  ;;  %v561_v23 = vcombine.low %v308_v20, %v308_v20 }
  0x36   : > { %367 = vmatprep.subr.bf16.mxu0 %v637_v13  ;;  %v435_v19 = vld [vmem:[%s839_s3] sm:$0xff]  ;;  %v409_v31 = vmul.f32 0.7, %v407_v27 }
  0x37   : > { %v360_v24 = vsel %vm358_vm0, %v561_v23, 0  ;;  %v299_v25 = vld [vmem:[%s837_s1] sm:$0xf] }
  0x38   : > { %v406_v26 = vld [vmem:[#allocation2] sm:$0xff] }
  0x39   : > { %368 = vmatpush1.bf16.msra.mxu0 %v639_v14  ;;  %438 = vperm.xlu0 %633, %v435_v19   ;;  %v408_v28 = vmul.f32 0.7, %v406_v26 }
  0x3a   : > { %369 = vmatprep.subr.bf16.mxu0 %v640_v15 }
  0x3d   : > { %370 = vmatpush1.bf16.msra.mxu0 %v642_v17 }
  0x3e   : > { %371 = vmatprep.subr.bf16.mxu0 %v643_v18 }
  0x41   : > { %372 = vmatpush1.bf16.msra.mxu0 %v645_v21 }
  0x42   : > { %563 = vmatprep.subr.msk.bf16.mxu0 %vm358_vm0, %v562_v22 }
  0x45   : > { %374 = vmatpush1.bf16.msra.mxu0 %v360_v24 }
  0x48   : > { %564 = vmatmul.mubr.msk.bf16.vlgmr.msra.gmra.mrb[0].mxu0 %vm354_vm1, %v299_v25 }
  0xb4   : > { %v418_v29 = vpop.permute.xlu0 %417 }
  0xb8   : > { %v439_v39 = vpop.permute.xlu0 %438 }
 0x11b   : > { %v399_v30 = vpop.f32.mrb[0].mxu0 }
 0x11c   : > { %v410_v32 = vmul.f32 0.3, %v399_v30  ;;  %v401_v33 = vpop.f32.mrb[1].mxu0 }
 0x11d   : > { %v411_v34 = vmul.f32 0.3, %v401_v33  ;;  %v403_v35 = vpop.f32.mrb[2].mxu0 }
 0x11e   : > { %v412_v36 = vadd.f32 %v410_v32, %v408_v28  ;;  %v404_v37 = vpop.f32.mrb[3].mxu0 }
 0x11f   : > { %v413_v38 = vadd.f32 %v411_v34, %v409_v31 }
 0x120   : > { %vm420_vm2 = vcmp.gt.f32.partialorder %v412_v36, %v418_v29 }
 0x121   : > { %vm421_vm3 = vcmp.gt.f32.partialorder %v413_v38, %v418_v29  ;;  %v565_v41 = vsel %vm420_vm2, 1.0, %v706_v40 }
 0x122   : > { %v566_v42 = vsel %vm421_vm3, 1.0, %v706_v40  ;;  %v441_v43 = vmul.f32 %v565_v41, %v439_v39 }
 0x123   : > { %v570_v44 = vpack.c.bf16 %v566_v42, %v565_v41  ;;  %v442_v45 = vmul.f32 %v566_v42, %v439_v39 }
 0x124   : > { %v443_v46 = vsub.f32 %v412_v36, %v441_v43 }
 0x125   : > { %434 = vst [vmem:[%s802_s6] sm:$0xff] %v570_v44  ;;  %v444_v47 = vsub.f32 %v413_v38, %v442_v45 }
 0x126   : > { %445 = vst [vmem:[#allocation2] sm:$0xff] %v443_v46 }
 0x127   : > { %446 = vst [vmem:[#allocation2 + $0x8] sm:$0xff] %v444_v47 }
 0x128 PF: > { %s14_s21 = sadd.s32 1, %s702_s21   ;;  %s841_s15 = smov %s682_s16 }
 0x129   : > { %p11_p13 = scmp.ge.s32.totalorder %s14_s21, 10   ;;  %s842_s16 = smov %s783_s28 }
 0x12a   : > { %s843_s17 = smov %s694_s19  ;;  %s844_s18 = smov %s698_s20 }
 0x12b   : > { %s845_s19 = smov %s848_s22  ;;  %s846_s20 = smov %s852_s23 }
 0x12c   :  { %13 = sbr.rel (!%p11_p13) target bundleno = 4 (0x4), region = 113 }

// kernel: _lambda_.8
= control target key start
LH: loop header
LB: loop body
LE: loop exit
PB: predicated region body
PF: predicated region fallthrough
CT: control target
= control target key end

     0   :  { %s610_s15 = smov 0   ;;  %s612_s16 = smov 0   ;;  %s661_s0 = inlined_call_operand.vmem [shape: bf16[4,72,128], index: 0, kind: input, shape index: {}]   ;;  %s662_s1 = inlined_call_operand.vmem [shape: bf16[16,72], index: 1, kind: input, shape index: {}]   ;;  %s663_s2 = inlined_call_operand.vmem [shape: f32[16,1], index: 2, kind: input, shape index: {}]   ;;  %s664_s3 = inlined_call_operand.vmem [shape: f32[16,1], index: 3, kind: input, shape index: {}]   ;;  %s665_s4 = inlined_call_operand.vmem [shape: bf16[4,16,128], index: 4, kind: output, shape index: {}]  }
   0x1   :  { %s614_s17 = smov 0  }
   0x2 LB: > { %s23_s18 = sadd.s32 1, %s575_s16  ;;  %p476_p0 = scmp.ge.s32.totalorder %s579_s17, 1  ;;  %s579_s17 = sphi %s614_s17, %s14_s17   ;;  %s575_s16 = sphi %s612_s16, %s667_s16   ;;  %s571_s15 = sphi %s610_s15, %s666_s15  }
   0x3   : > { %p24_p1 = scmp.ge.s32.totalorder %s23_s18, 4  ;;  %p181_p2 = scmp.lt.s32.totalorder %s579_s17, 5 }
   0x5   : > { %s669_s18 = smov (%p24_p1, %s23_s18), 0  ;;  %p182_p3 = pnand %p476_p0, %p181_p2 }
   0x6   : > { %p214_p4 = scmp.lt.s32.totalorder (!%p182_p3), %s571_s15, 3  ;;  %p480_p5 = scmp.ne.s32.totalorder (!%p182_p3), %s571_s15, 0 }
   0x7   : > { %185 = sbr.rel (%p182_p3) target bundleno = 268 (0x10c), region = 36 }
   0xe   : > { %s215_s19 = scalar_select %p214_p4, %s571_s15, 3 }
   0xf   : > { %236 = sbr.rel (%p480_p5) target bundleno = 22 (0x16), region = 40  ;;  %v581_v0 = vmov (!%p480_p5), 0.0  }
  0x10   : > { %s520_s20 = smul.u32 36, %s215_s19  ;;  %s494_s21 = sshll.u32 %s215_s19, 3  ;;  %237 = vst [vmem:[#allocation2] sm:$0xff] (!%p480_p5), %v581_v0  ;;  %238 = vst [vmem:[#allocation2 + $0x8] sm:$0xff] (!%p480_p5), %v581_v0 }
  0x11   : > { %s631_s24 = scalar_lea.vmem %s665_s4, %s494_s21 }
  0x12   : > { %s221_s27 = scalar_lea.vmem %s661_s0, %s520_s20 }
  0x16 PF: > { %v551_v1 = vld [vmem:[%s221_s27] sm:$0xff]   ;;  %v582_v2 = vmov 0.0   ;;  %v552_v3 = vld [vmem:[%s221_s27 + $0x8] sm:$0xff]   ;;  %vm583_vm0 = vmmov 0   ;;  %v553_v5 = vld [vmem:[%s221_s27 + $0x10] sm:$0xff]   ;;  %v584_v6 = vmov 0  }
  0x17   : > { %506 = vmatprep.subr.bf16.mxu0 %v582_v2  ;;  %516 = vmatprep.mubr.msk.bf16.mxu0 %vm583_vm0, %v582_v2  ;;  %v339_v4 = vld [vmem:[%s663_s2] sm:$0xff]  ;;  %v340_v8 = vld [vmem:[%s663_s2 + $0x8] sm:$0xff]  ;;  %v554_v9 = vld [vmem:[%s221_s27 + $0x18] sm:$0xff]   ;;  %vm286_vm1 = vcmask 1043456   ;;  %vm282_vm2 = vcmask 588800  }
  0x18   : > { %507 = vmatpush3.bf16.msra.mxu0 %v551_v1  ;;  %549 = vset.pattern.permute.xlu0 %v584_v6  ;;  %v367_v7 = vld [vmem:[%s664_s3] sm:$0xff]  ;;  %v368_v10 = vld [vmem:[%s664_s3 + $0x8] sm:$0xff] }
  0x19   : > { %508 = vmatprep.subr.bf16.mxu0 %v582_v2  ;;  %343 = vperm.xlu0 %549, %v339_v4   ;;  %v555_v11 = vld [vmem:[%s221_s27 + $0x20] ss:$0 sps:$4 sm:$0xff]   ;;  %v332_v15 = vld [vmem:[#allocation2 + $0x8] sm:$0xff] }
  0x1a   : > { %550 = vset.pattern.permute.xlu1 %v584_v6  ;;  %v288_v12 = vsel %vm286_vm1, %v555_v11, 0  ;;  %v556_v13 = vld [vmem:[%s662_s1] sm:$0xff]   ;;  %v334_v21 = vmul.f32 0.7, %v332_v15 }
  0x1b   : > { %371 = vperm.xlu1 %550, %v367_v7   ;;  %v331_v14 = vld [vmem:[#allocation2] sm:$0xff] }
  0x1c   : > { %509 = vmatpush3.bf16.msra.mxu0 %v552_v3  ;;  %v333_v16 = vmul.f32 0.7, %v331_v14 }
  0x1d   : > { %510 = vmatprep.subr.bf16.mxu0 %v582_v2  ;;  %348 = vperm.xlu0 %549, %v340_v8  }
  0x1f   : > { %376 = vperm.xlu1 %550, %v368_v10  }
  0x20   : > { %511 = vmatpush3.bf16.msra.mxu0 %v553_v5 }
  0x21   : > { %512 = vmatprep.subr.bf16.mxu0 %v582_v2 }
  0x24   : > { %513 = vmatpush3.bf16.msra.mxu0 %v554_v9 }
  0x25   : > { %514 = vmatprep.subr.bf16.mxu0 %v582_v2 }
  0x28   : > { %515 = vmatpush3.bf16.msra.mxu0 %v288_v12 }
  0x2b   : > { %517 = vmatmul.mubr.msk.bf16.vlgmr.msra.gmra.mrb[0].mxu0 %vm282_vm2, %v556_v13 }
  0x98   : > { %v344_v17 = vpop.permute.xlu0 %343 }
  0x9a   : > { %v372_v22 = vpop.permute.xlu1 %371 }
  0x9c   : > { %v349_v28 = vpop.permute.xlu0 %348 }
  0x9e   : > { %v377_v31 = vpop.permute.xlu1 %376 }
  0xfe   : > { %v324_v18 = vpop.f32.mrb[0].mxu0 }
  0xff   : > { %v335_v19 = vmul.f32 0.3, %v324_v18  ;;  %v518_v20 = vpop.f32.mrb[1].mxu0 }
 0x100   : > { %v327_v23 = vpop.f32.mrb[2].mxu0 }
 0x101   : > { %v337_v24 = vadd.f32 %v335_v19, %v333_v16  ;;  %v336_v25 = vmul.f32 0.3, %v327_v23  ;;  %v519_v26 = vpop.f32.mrb[3].mxu0 }
 0x103   : > { %v338_v27 = vadd.f32 %v336_v25, %v334_v21  ;;  %vm351_vm3 = vcmp.gt.f32.partialorder %v337_v24, %v344_v17 }
 0x104   : > { %v488_v29 = vsel %vm351_vm3, 1.0, %v582_v2 }
 0x105   : > { %vm352_vm4 = vcmp.gt.f32.partialorder %v338_v27, %v349_v28  ;;  %v379_v30 = vmul.f32 %v488_v29, %v372_v22 }
 0x106   : > { %v489_v32 = vsel %vm352_vm4, 1.0, %v582_v2 }
 0x107   : > { %v498_v33 = vpack.c.bf16 %v489_v32, %v488_v29  ;;  %v380_v34 = vmul.f32 %v489_v32, %v377_v31  ;;  %v381_v35 = vsub.f32 %v337_v24, %v379_v30 }
 0x109   : > { %499 = vst [vmem:[%s631_s24] sm:$0xff] %v498_v33   ;;  %v382_v36 = vsub.f32 %v338_v27, %v380_v34  ;;  %383 = vst [vmem:[#allocation2] sm:$0xff] %v381_v35 }
 0x10b   : > { %384 = vst [vmem:[#allocation2 + $0x8] sm:$0xff] %v382_v36 }
 0x10c PF: > { %s14_s17 = sadd.s32 1, %s579_s17   ;;  %s666_s15 = smov %s575_s16 }
 0x10d   : > { %p11_p6 = scmp.ge.s32.totalorder %s14_s17, 6   ;;  %s667_s16 = smov %s669_s18 }
 0x10f   :  { %13 = sbr.rel (!%p11_p6) target bundleno = 2 (0x2), region = 70 }

// kernel: _lambda_.9
= control target key start
LH: loop header
LB: loop body
LE: loop exit
PB: predicated region body
PF: predicated region fallthrough
CT: control target
= control target key end

     0   :  { %vm499_vm0 = vmmov 0   ;;  %vm91_vm1 = vcmask 523264   ;;  %vm313_vm2 = vcmask 89088   ;;  %s758_s1 = inlined_call_operand.vmem [shape: f32[576,11], index: 1, kind: input, shape index: {}]   ;;  %s759_s0 = inlined_call_operand.vmem [shape: f32[8,576], index: 0, kind: input, shape index: {}]   ;;  %s760_s2 = inlined_call_operand.vmem [shape: f32[1,11], index: 2, kind: input, shape index: {}]   ;;  %s761_s3 = inlined_call_operand.vmem [shape: f32[8,11], index: 3, kind: output, shape index: {}]  }
   0x1   :  { %v35_v0 = vld [vmem:[%s758_s1 + $0x80] sm:$0xff]  ;;  %v36_v1 = vld [vmem:[%s758_s1 + $0x88] sm:$0xff]  ;;  %v37_v11 = vld [vmem:[%s758_s1 + $0x90] sm:$0xff] }
   0x2   :  { %v67_v2 = vld [vmem:[%s758_s1 + $0x180] sm:$0xff]  ;;  %v419_v3 = vpack.c.bf16 %v36_v1, %v35_v0  ;;  %v68_v4 = vld [vmem:[%s758_s1 + $0x188] sm:$0xff]  ;;  %v38_v13 = vld [vmem:[%s758_s1 + $0x98] sm:$0xff] }
   0x3   :  { %v19_v5 = vld [vmem:[%s758_s1] sm:$0xff]  ;;  %v20_v6 = vld [vmem:[%s758_s1 + $0x8] sm:$0xff]  ;;  %v451_v7 = vpack.c.bf16 %v68_v4, %v67_v2  ;;  %v69_v14 = vld [vmem:[%s758_s1 + $0x190] sm:$0xff]  ;;  %v423_v16 = vpack.c.bf16 %v38_v13, %v37_v11 }
   0x4   :  { %v421_v8 = vpack.c.bf16 %v20_v6, %v19_v5  ;;  %v51_v9 = vld [vmem:[%s758_s1 + $0x100] sm:$0xff]  ;;  %v52_v10 = vld [vmem:[%s758_s1 + $0x108] sm:$0xff]  ;;  %420 = vmatprep.subr.bf16.mxu0 %v419_v3  ;;  %v70_v15 = vld [vmem:[%s758_s1 + $0x198] sm:$0xff] }
   0x5   :  { %v453_v12 = vpack.c.bf16 %v52_v10, %v51_v9  ;;  %452 = vmatprep.subr.bf16.mxu1 %v451_v7  ;;  %v455_v17 = vpack.c.bf16 %v70_v15, %v69_v14  ;;  %v21_v18 = vld [vmem:[%s758_s1 + $0x10] sm:$0xff]  ;;  %v22_v19 = vld [vmem:[%s758_s1 + $0x18] sm:$0xff]  ;;  %v39_v23 = vld [vmem:[%s758_s1 + $0xa0] sm:$0xff] }
   0x6   :  { %422 = vmatpush3.bf16.msra.mxu0 %v421_v8  ;;  %v53_v20 = vld [vmem:[%s758_s1 + $0x110] sm:$0xff]  ;;  %v425_v21 = vpack.c.bf16 %v22_v19, %v21_v18  ;;  %v54_v22 = vld [vmem:[%s758_s1 + $0x118] sm:$0xff]  ;;  %v40_v24 = vld [vmem:[%s758_s1 + $0xa8] sm:$0xff] }
   0x7   :  { %454 = vmatpush3.bf16.msra.mxu1 %v453_v12  ;;  %424 = vmatprep.subr.bf16.mxu0 %v423_v16  ;;  %v457_v25 = vpack.c.bf16 %v54_v22, %v53_v20  ;;  %v427_v26 = vpack.c.bf16 %v40_v24, %v39_v23  ;;  %v71_v27 = vld [vmem:[%s758_s1 + $0x1a0] sm:$0xff]  ;;  %v72_v28 = vld [vmem:[%s758_s1 + $0x1a8] sm:$0xff]  ;;  %v41_v35 = vld [vmem:[%s758_s1 + $0xb0] sm:$0xff] }
   0x8   :  { %456 = vmatprep.subr.bf16.mxu1 %v455_v17  ;;  %v23_v29 = vld [vmem:[%s758_s1 + $0x20] sm:$0xff]  ;;  %v459_v30 = vpack.c.bf16 %v72_v28, %v71_v27  ;;  %v24_v31 = vld [vmem:[%s758_s1 + $0x28] sm:$0xff]  ;;  %v42_v36 = vld [vmem:[%s758_s1 + $0xb8] sm:$0xff] }
   0x9   :  { %v55_v32 = vld [vmem:[%s758_s1 + $0x120] sm:$0xff]  ;;  %v56_v33 = vld [vmem:[%s758_s1 + $0x128] sm:$0xff]  ;;  %v429_v34 = vpack.c.bf16 %v24_v31, %v23_v29  ;;  %v73_v37 = vld [vmem:[%s758_s1 + $0x1b0] sm:$0xff]  ;;  %v431_v39 = vpack.c.bf16 %v42_v36, %v41_v35 }
   0xa   :  { %426 = vmatpush3.bf16.msra.mxu0 %v425_v21  ;;  %v461_v38 = vpack.c.bf16 %v56_v33, %v55_v32  ;;  %v74_v40 = vld [vmem:[%s758_s1 + $0x1b8] sm:$0xff]  ;;  %v25_v41 = vld [vmem:[%s758_s1 + $0x30] sm:$0xff]  ;;  %v43_v46 = vld [vmem:[%s758_s1 + $0xc0] sm:$0xff] }
   0xb   :  { %458 = vmatpush3.bf16.msra.mxu1 %v457_v25  ;;  %428 = vmatprep.subr.bf16.mxu0 %v427_v26  ;;  %v26_v42 = vld [vmem:[%s758_s1 + $0x38] sm:$0xff]  ;;  %v463_v43 = vpack.c.bf16 %v74_v40, %v73_v37  ;;  %v57_v44 = vld [vmem:[%s758_s1 + $0x130] sm:$0xff]  ;;  %v44_v47 = vld [vmem:[%s758_s1 + $0xc8] sm:$0xff] }
   0xc   :  { %460 = vmatprep.subr.bf16.mxu1 %v459_v30  ;;  %v58_v45 = vld [vmem:[%s758_s1 + $0x138] sm:$0xff]  ;;  %v75_v48 = vld [vmem:[%s758_s1 + $0x1c0] sm:$0xff]  ;;  %v76_v49 = vld [vmem:[%s758_s1 + $0x1c8] sm:$0xff]  ;;  %v433_v50 = vpack.c.bf16 %v26_v42, %v25_v41  ;;  %v435_v52 = vpack.c.bf16 %v44_v47, %v43_v46 }
   0xd   :  { %v465_v51 = vpack.c.bf16 %v58_v45, %v57_v44  ;;  %v27_v53 = vld [vmem:[%s758_s1 + $0x40] sm:$0xff]  ;;  %v28_v54 = vld [vmem:[%s758_s1 + $0x48] sm:$0xff]  ;;  %v467_v56 = vpack.c.bf16 %v76_v49, %v75_v48  ;;  %v45_v58 = vld [vmem:[%s758_s1 + $0xd0] sm:$0xff]  ;;  %v500_v45 = vmov 0.0  }
   0xe   :  { %430 = vmatpush3.bf16.msra.mxu0 %v429_v34  ;;  %v59_v55 = vld [vmem:[%s758_s1 + $0x140] sm:$0xff]  ;;  %v60_v57 = vld [vmem:[%s758_s1 + $0x148] sm:$0xff]  ;;  %v46_v59 = vld [vmem:[%s758_s1 + $0xd8] sm:$0xff]  ;;  %v437_v62 = vpack.c.bf16 %v28_v54, %v27_v53 }
   0xf   :  { %462 = vmatpush3.bf16.msra.mxu1 %v461_v38  ;;  %432 = vmatprep.subr.bf16.mxu0 %v431_v39  ;;  %v77_v60 = vld [vmem:[%s758_s1 + $0x1d0] sm:$0xff]  ;;  %v78_v61 = vld [vmem:[%s758_s1 + $0x1d8] sm:$0xff]  ;;  %v469_v63 = vpack.c.bf16 %v60_v57, %v59_v55  ;;  %v439_v0 = vpack.c.bf16 %v46_v59, %v45_v58  ;;  %v47_v6 = vld [vmem:[%s758_s1 + $0xe0] sm:$0xff]  ;;  %v498_v39 = vmov 0.0|0.0  }
  0x10   :  { %464 = vmatprep.subr.bf16.mxu1 %v463_v43  ;;  %v29_v1 = vld [vmem:[%s758_s1 + $0x50] sm:$0xff]  ;;  %v30_v2 = vld [vmem:[%s758_s1 + $0x58] sm:$0xff]  ;;  %v471_v4 = vpack.c.bf16 %v78_v61, %v77_v60  ;;  %v48_v7 = vld [vmem:[%s758_s1 + $0xe8] sm:$0xff] }
  0x11   :  { %v61_v3 = vld [vmem:[%s758_s1 + $0x150] sm:$0xff]  ;;  %v62_v5 = vld [vmem:[%s758_s1 + $0x158] sm:$0xff]  ;;  %v79_v8 = vld [vmem:[%s758_s1 + $0x1e0] sm:$0xff]  ;;  %v441_v10 = vpack.c.bf16 %v30_v2, %v29_v1  ;;  %v443_v14 = vpack.c.bf16 %v48_v7, %v47_v6 }
  0x12   :  { %434 = vmatpush3.bf16.msra.mxu0 %v433_v50  ;;  %v80_v9 = vld [vmem:[%s758_s1 + $0x1e8] sm:$0xff]  ;;  %v31_v11 = vld [vmem:[%s758_s1 + $0x60] sm:$0xff]  ;;  %v473_v13 = vpack.c.bf16 %v62_v5, %v61_v3  ;;  %v17_v17 = vld [vmem:[%s759_s0 + $0x18] sm:$0xff] }
  0x13   :  { %466 = vmatpush3.bf16.msra.mxu1 %v465_v51  ;;  %436 = vmatprep.subr.bf16.mxu0 %v435_v52  ;;  %v32_v12 = vld [vmem:[%s758_s1 + $0x68] sm:$0xff]  ;;  %v63_v15 = vld [vmem:[%s758_s1 + $0x160] sm:$0xff]  ;;  %v475_v18 = vpack.c.bf16 %v80_v9, %v79_v8  ;;  %v49_v20 = vld [vmem:[%s758_s1 + $0xf0] sm:$0xff] }
  0x14   :  { %468 = vmatprep.subr.bf16.mxu1 %v467_v56  ;;  %v15_v16 = vld [vmem:[%s759_s0 + $0x8] sm:$0xff]  ;;  %v50_v21 = vld [vmem:[%s758_s1 + $0xf8] sm:$0xff]  ;;  %v81_v22 = vld [vmem:[%s758_s1 + $0x1f0] sm:$0xff]  ;;  %229 = vmatprep.mubr.f32.mxu1 %v17_v17  ;;  %v445_v24 = vpack.c.bf16 %v32_v12, %v31_v11 }
  0x15   :  { %v64_v19 = vld [vmem:[%s758_s1 + $0x168] sm:$0xff]  ;;  %159 = vmatprep.mubr.f32.mxu0 %v15_v16  ;;  %v82_v23 = vld [vmem:[%s758_s1 + $0x1f8] sm:$0xff]  ;;  %v447_v26 = vpack.c.bf16 %v50_v21, %v49_v20  ;;  %v33_v27 = vld [vmem:[%s758_s1 + $0x70] sm:$0xff] }
  0x16   :  { %438 = vmatpush3.bf16.msra.mxu0 %v437_v62  ;;  %v477_v25 = vpack.c.bf16 %v64_v19, %v63_v15  ;;  %v34_v28 = vld [vmem:[%s758_s1 + $0x78] sm:$0xff]  ;;  %v479_v29 = vpack.c.bf16 %v82_v23, %v81_v22  ;;  %v65_v30 = vld [vmem:[%s758_s1 + $0x170] sm:$0xff]  ;;  %v83_v34 = vld [vmem:[%s758_s1 + $0x200] sm:$0xff] }
  0x17   :  { %470 = vmatpush3.bf16.msra.mxu1 %v469_v63  ;;  %440 = vmatprep.subr.bf16.mxu0 %v439_v0  ;;  %v66_v31 = vld [vmem:[%s758_s1 + $0x178] sm:$0xff]  ;;  %v449_v32 = vpack.c.bf16 %v34_v28, %v33_v27  ;;  %v84_v35 = vld [vmem:[%s758_s1 + $0x208] sm:$0xff]  ;;  %v14_v36 = vld [vmem:[%s759_s0] sm:$0xff] }
  0x18   :  { %472 = vmatprep.subr.bf16.mxu1 %v471_v4  ;;  %v481_v33 = vpack.c.bf16 %v66_v31, %v65_v30  ;;  %v484_v37 = vpack.c.bf16 %v84_v35, %v83_v34  ;;  %v16_v38 = vld [vmem:[%s759_s0 + $0x10] sm:$0xff]  ;;  %v86_v41 = vld [vmem:[%s758_s1 + $0x218] sm:$0xff]  ;;  %v87_v43 = vld [vmem:[%s758_s1 + $0x220] sm:$0xff] }
  0x19   :  { %v85_v40 = vld [vmem:[%s758_s1 + $0x210] sm:$0xff]  ;;  %v88_v44 = vld [vmem:[%s758_s1 + $0x228] sm:$0xff]  ;;  %v90_v48 = vld [vmem:[%s758_s1 + $0x238] sm:$0xff] }
  0x1a   :  { %442 = vmatpush3.bf16.msra.mxu0 %v441_v10  ;;  %v487_v42 = vpack.c.bf16 %v86_v41, %v85_v40  ;;  %v490_v46 = vpack.c.bf16 %v88_v44, %v87_v43  ;;  %v89_v47 = vld [vmem:[%s758_s1 + $0x230] sm:$0xff]  ;;  %v18_v50 = vld [vmem:[%s759_s0 + $0x20] sm:$0xff] }
  0x1b   :  { %474 = vmatpush3.bf16.msra.mxu1 %v473_v13  ;;  %444 = vmatprep.subr.bf16.mxu0 %v443_v14  ;;  %v493_v49 = vpack.c.bf16 %v90_v48, %v89_v47  ;;  %v320_v59 = vld [vmem:[%s760_s2] ss:$0 sm:$0xff] }
  0x1c   :  { %476 = vmatprep.subr.bf16.mxu1 %v475_v18 }
  0x1e   :  { %446 = vmatpush3.bf16.msra.mxu0 %v445_v24 }
  0x1f   :  { %478 = vmatpush3.bf16.msra.mxu1 %v477_v25  ;;  %448 = vmatprep.subr.bf16.mxu0 %v447_v26 }
  0x20   :  { %480 = vmatprep.subr.bf16.mxu1 %v479_v29 }
  0x22   :  { %450 = vmatpush3.bf16.msra.mxu0 %v449_v32 }
  0x23   :  { %482 = vmatpush3.bf16.msra.mxu1 %v481_v33  ;;  %483 = vmatprep.subr.bf16.mxu0 %v498_v39 }
  0x25   :  { %160 = vmatmul.mubr.f32.vlgmr.msra.gmra.mrb[0].mxu0 %v14_v36 }
  0x26   :  { %230 = vmatmul.mubr.f32.vlgmr.msra.gmra.mrb[0].mxu1 %v16_v38  ;;  %485 = vmatpush3.bf16.msra.mxu0 %v484_v37 }
  0x27   :  { %486 = vmatprep.subr.bf16.mxu0 %v498_v39  ;;  %416 = vmatprep.mubr.msk.f32.mxu0 %vm499_vm0, %v500_v45 }
  0x2a   :  { %488 = vmatpush3.bf16.msra.mxu0 %v487_v42 }
  0x2b   :  { %489 = vmatprep.subr.bf16.mxu0 %v498_v39 }
  0x2e   :  { %491 = vmatpush3.bf16.msra.mxu0 %v490_v46 }
  0x2f   :  { %492 = vmatprep.subr.bf16.mxu0 %v498_v39 }
  0x32   :  { %494 = vmatpush3.bf16.msra.mxu0 %v493_v49 }
  0x35   :  { %417 = vmatmul.mubr.msk.f32.vlgmr.msra.gmra.mrb[2].mxu0 %vm91_vm1, %v18_v50 }
  0xf8   :  { %v353_v51 = vpop.f32.mrb[0].mxu0 }
  0xf9   :  { %v388_v52 = vpop.f32.mrb[0].mxu1  ;;  %v354_v53 = vpop.f32.mrb[1].mxu0 }
  0xfa   :  { %v355_v54 = vadd.f32 %v354_v53, %v353_v51  ;;  %v389_v55 = vpop.f32.mrb[1].mxu1 }
  0xfb   :  { %v390_v56 = vadd.f32 %v389_v55, %v388_v52 }
  0xfd   :  { %v232_v57 = vadd.f32 %v390_v56, %v355_v54 }
 0x108   :  { %v301_v58 = vpop.f32.mrb[2].mxu0 }
 0x109   :  { %v302_v60 = vadd.f32 %v301_v58, %v232_v57  ;;  %v418_v61 = vpop.f32.mrb[3].mxu0 }
 0x10b   :  { %v312_v62 = vsub.f32 %v302_v60, %v320_v59 }
 0x10d   :  { %314 = vst.msk [vmem:[%s761_s3] sm:$0xff] %vm313_vm2, %v312_v62 }

</bundles_post_ra>
